<compile_context>
chip_gen: v6e
topology: v6e:2x2x1
jax: 0.10.0
libtpu: 0.0.40
codegen_flags: <defaults>
</compile_context>

<pallas_src>
import functools

import jax
import jax.numpy as jnp
from jax.experimental import pallas as pl
from jax.experimental.pallas import tpu as pltpu

BN_EPS = 1e-5
LANE = 128
VMEM_LIMIT_BYTES = 48 * 1024 * 1024  # > v5e/v6e scoped defaults, < v7x 64 MiB physical


# ------------------------------- helpers ----------------------------------- #

def _ru(x, m):
    return ((x + m - 1) // m) * m


def _tile_m_for(m):
    if m >= 4096:
        return 512
    if m >= 1024:
        return 256
    return 128


def _pad2d(a, rows, cols):
    return jnp.pad(a, ((0, rows - a.shape[0]), (0, cols - a.shape[1])))


def _compiler_params():
    return pltpu.CompilerParams(
        dimension_semantics=("parallel",),
        vmem_limit_bytes=VMEM_LIMIT_BYTES,
    )


# ----------------------------- Pallas kernels ------------------------------ #

def _mm_bias_kernel(x_ref, w_ref, b_ref, o_ref):
    # (TILE_M, K)bf16 @ (K, N)bf16 -> f32 acc, + bias
    acc = jnp.dot(x_ref[...], w_ref[...], preferred_element_type=jnp.float32)
    o_ref[...] = (acc + b_ref[...]).astype(o_ref.dtype)


def _mm_bias_stats_kernel(x_ref, w_ref, b_ref, o_ref, stats_ref, *, tile_m, m_valid):
    # Pass 1 of Conv+BN: conv output (pre-BN) + per-tile partial BN statistics.
    acc = jnp.dot(x_ref[...], w_ref[...], preferred_element_type=jnp.float32)
    acc = acc + b_ref[...]
    o_ref[...] = acc.astype(o_ref.dtype)

    # Mask rows that are only M-padding so the batch statistics stay unbiased.
    row = pl.program_id(0) * tile_m + jax.lax.broadcasted_iota(
        jnp.int32, (tile_m, 1), 0)
    masked = jnp.where(row < m_valid, acc, 0.0)
    s1 = jnp.sum(masked, axis=0, keepdims=True)        # (1, N)  sum
    s2 = jnp.sum(masked * acc, axis=0, keepdims=True)  # (1, N)  sum of squares
    stats_ref[0] = jnp.concatenate([s1, s2], axis=0)   # (2, N)


def _bn_relu_kernel(z_ref, scale_ref, shift_ref, o_ref):
    # Pass 2: y = relu(z * scale + shift), scale/shift precomputed per channel.
    y = z_ref[...] * scale_ref[...] + shift_ref[...]
    o_ref[...] = jnp.maximum(y, 0.0).astype(o_ref.dtype)


# ------------------------- tiled matmul wrappers ---------------------------- #

def _matmul_bias(x, w, b, out_dtype=jnp.bfloat16):
    """(M,K) @ (K,N) + b, tiled over M; K/N padded to 128 lanes, bf16 MXU."""
    M, K = x.shape
    N = w.shape[1]
    Kp, Np = _ru(K, LANE), _ru(N, LANE)
    tm = _tile_m_for(M)
    Mp = _ru(M, tm)
    num_tiles = Mp // tm

    xp = _pad2d(x.astype(jnp.bfloat16), Mp, Kp)
    wp = _pad2d(w.astype(jnp.bfloat16), Kp, Np)
    bp = jnp.pad(b.astype(jnp.float32), (0, Np - N)).reshape(1, Np)

    out = pl.pallas_call(
        _mm_bias_kernel,
        out_shape=jax.ShapeDtypeStruct((Mp, Np), out_dtype),
        grid=(num_tiles,),
        in_specs=[
            pl.BlockSpec((tm, Kp), lambda i: (i, 0)),
            pl.BlockSpec((Kp, Np), lambda i: (0, 0)),
            pl.BlockSpec((1, Np), lambda i: (0, 0)),
        ],
        out_specs=pl.BlockSpec((tm, Np), lambda i: (i, 0)),
        compiler_params=_compiler_params(),
        cost_estimate=pl.CostEstimate(
            flops=2 * Mp * Kp * Np,
            transcendentals=0,
            bytes_accessed=(Mp * Kp + Kp * Np) * 2
            + Mp * Np * jnp.dtype(out_dtype).itemsize,
        ),
    )(xp, wp, bp)
    return out[:M, :N]


def _conv_bn_relu_matmul(cols, w, b, gamma, beta, out_dtype=jnp.bfloat16):
    """im2col rows (M,K) @ (K,N) + b, then training-mode BatchNorm + ReLU.

    Two tiled passes keep the batch statistics global while the matmul is
    gridded over M (padded rows masked out of the statistics)."""
    M, K = cols.shape
    N = w.shape[1]
    Kp, Np = _ru(K, LANE), _ru(N, LANE)
    tm = _tile_m_for(M)
    Mp = _ru(M, tm)
    num_tiles = Mp // tm

    xp = _pad2d(cols.astype(jnp.bfloat16), Mp, Kp)
    wp = _pad2d(w.astype(jnp.bfloat16), Kp, Np)
    bp = jnp.pad(b.astype(jnp.float32), (0, Np - N)).reshape(1, Np)

    kern = functools.partial(_mm_bias_stats_kernel, tile_m=tm, m_valid=M)
    z_pad, stats = pl.pallas_call(
        kern,
        out_shape=(
            jax.ShapeDtypeStruct((Mp, Np), jnp.float32),
            jax.ShapeDtypeStruct((num_tiles, 2, Np), jnp.float32),
        ),
        grid=(num_tiles,),
        in_specs=[
            pl.BlockSpec((tm, Kp), lambda i: (i, 0)),
            pl.BlockSpec((Kp, Np), lambda i: (0, 0)),
            pl.BlockSpec((1, Np), lambda i: (0, 0)),
        ],
        out_specs=(
            pl.BlockSpec((tm, Np), lambda i: (i, 0)),
            pl.BlockSpec((1, 2, Np), lambda i: (i, 0, 0)),
        ),
        compiler_params=_compiler_params(),
        cost_estimate=pl.CostEstimate(
            flops=2 * Mp * Kp * Np,
            transcendentals=0,
            bytes_accessed=(Mp * Kp + Kp * Np) * 2 + Mp * Np * 4,
        ),
    )(xp, wp, bp)

    # Tiny (num_tiles x Np) cross-tile reduction -> global batch statistics.
    ssum = jnp.sum(stats[:, 0, :], axis=0)
    ssq = jnp.sum(stats[:, 1, :], axis=0)
    mean = ssum / M
    var = jnp.maximum(ssq / M - mean * mean, 0.0)  # biased var (PyTorch train mode)
    gp = jnp.pad(gamma.astype(jnp.float32), (0, Np - N))
    btp = jnp.pad(beta.astype(jnp.float32), (0, Np - N))
    scale = gp * jax.lax.rsqrt(var + BN_EPS)
    shift = btp - mean * scale

    a_pad = pl.pallas_call(
        _bn_relu_kernel,
        out_shape=jax.ShapeDtypeStruct((Mp, Np), out_dtype),
        grid=(num_tiles,),
        in_specs=[
            pl.BlockSpec((tm, Np), lambda i: (i, 0)),
            pl.BlockSpec((1, Np), lambda i: (0, 0)),
            pl.BlockSpec((1, Np), lambda i: (0, 0)),
        ],
        out_specs=pl.BlockSpec((tm, Np), lambda i: (i, 0)),
        compiler_params=_compiler_params(),
    )(z_pad, scale.reshape(1, Np), shift.reshape(1, Np))
    return a_pad[:M, :N]


# ------------------------------- JAX glue ----------------------------------- #

def _conv_transpose_2x2_s2(x_nhwc, w_up, b_up):
    """PyTorch ConvTranspose2d(Cin, Cout, 2, 2). w_up: (Cin, Cout, 2, 2)."""
    N, H, W, Cin = x_nhwc.shape
    Cout = w_up.shape[1]
    # columns ordered (ki, kj, co)
    w_mat = jnp.transpose(w_up, (0, 2, 3, 1)).reshape(Cin, 4 * Cout)
    b_mat = jnp.tile(b_up, 4)
    y = _matmul_bias(x_nhwc.reshape(N * H * W, Cin), w_mat, b_mat,
                     out_dtype=jnp.bfloat16)
    y = y.reshape(N, H, W, 2, 2, Cout)
    # TODO(synk): fold this interleave/pad/concat data movement into the Pallas
    # out_spec index_map so the upsampled tensor doesn't round-trip through HBM.
    y = jnp.transpose(y, (0, 1, 3, 2, 4, 5)).reshape(N, 2 * H, 2 * W, Cout)
    return y


def _im2col_3x3(x_nhwc):
    N, H, W, C = x_nhwc.shape
    Ho, Wo = H - 2, W - 2
    # TODO(synk): replace the XLA-side im2col (9x HBM expansion, here in bf16)
    # with in-kernel halo reads / manual DMA of shifted NHWC windows.
    cols = jnp.concatenate(
        [x_nhwc[:, i:i + Ho, j:j + Wo, :] for i in range(3) for j in range(3)],
        axis=-1,
    )
    return cols.reshape(N * Ho * Wo, 9 * C), (N, Ho, Wo)


def _conv3x3_bn_relu(x_nhwc, w_oihw, b, gamma, beta, out_dtype=jnp.bfloat16):
    """Conv2d(Cin, Cout, 3, stride=1, padding=0) + BN(train) + ReLU."""
    Cout = w_oihw.shape[0]
    cols, (N, Ho, Wo) = _im2col_3x3(x_nhwc)
    # rows ordered (kh, kw, ci) to match the im2col column ordering
    w_mat = jnp.transpose(w_oihw, (2, 3, 1, 0)).reshape(-1, Cout)
    y = _conv_bn_relu_matmul(cols, w_mat, b, gamma, beta, out_dtype=out_dtype)
    return y.reshape(N, Ho, Wo, Cout)


def up_forward(params, x1_nchw, x2_nchw):
    """Forward of `Up(in_ch, out_ch, bilinear=False)`. Inputs/outputs NCHW."""
    x1 = jnp.transpose(x1_nchw, (0, 2, 3, 1))
    x2 = jnp.transpose(x2_nchw, (0, 2, 3, 1))

    # self.up (ConvTranspose2d 2x2 stride 2)
    y = _conv_transpose_2x2_s2(x1, params["w_up"], params["b_up"])

    # F.pad to x2 spatial size
    dY = x2.shape[1] - y.shape[1]
    dX = x2.shape[2] - y.shape[2]
    y = jnp.pad(y, ((0, 0), (dY // 2, dY - dY // 2),
                    (dX // 2, dX - dX // 2), (0, 0)))

    # torch.cat([x2, x1], dim=1) -> channel axis last in NHWC (kept in bf16)
    x = jnp.concatenate([x2.astype(jnp.bfloat16), y], axis=-1)

    # DoubleConv: intermediate activation in bf16, final output in f32
    x = _conv3x3_bn_relu(x, params["w1"], params["b1"], params["g1"],
                         params["beta1"], out_dtype=jnp.bfloat16)
    x = _conv3x3_bn_relu(x, params["w2"], params["b2"], params["g2"],
                         params["beta2"], out_dtype=jnp.float32)

    return jnp.transpose(x, (0, 3, 1, 2))  # back to NCHW


def init_up_params(key, in_ch, out_ch):
    """Deterministic synthetic parameters, shapes as in Up.__init__ (bilinear=False)."""
    ks = jax.random.split(key, 6)
    mid = out_ch  # DoubleConv(in_ch, out_ch) -> mid_ch = out_ch
    return {
        # ConvTranspose2d(in_ch, in_ch//2, 2, 2): weight (Cin, Cout, kH, kW)
        "w_up": jax.random.normal(ks[0], (in_ch, in_ch // 2, 2, 2), jnp.float32) * 0.1,
        "b_up": jax.random.normal(ks[1], (in_ch // 2,), jnp.float32) * 0.1,
        # Conv2d weights in PyTorch OIHW layout
        "w1": jax.random.normal(ks[2], (mid, in_ch, 3, 3), jnp.float32) * 0.1,
        "b1": jax.random.normal(ks[3], (mid,), jnp.float32) * 0.1,
        "w2": jax.random.normal(ks[4], (out_ch, mid, 3, 3), jnp.float32) * 0.1,
        "b2": jax.random.normal(ks[5], (out_ch,), jnp.float32) * 0.1,
        # BatchNorm2d affine params at init: gamma=1, beta=0
        "g1": jnp.ones((mid,), jnp.float32),
        "beta1": jnp.zeros((mid,), jnp.float32),
        "g2": jnp.ones((out_ch,), jnp.float32),
        "beta2": jnp.zeros((out_ch,), jnp.float32),
    }


if __name__ == "__main__":
    in_ch, out_ch = 8, 4
    key = jax.random.PRNGKey(0)
    kp, k1, k2 = jax.random.split(key, 3)

    params = init_up_params(kp, in_ch, out_ch)

    # x1: low-res feature map (N, in_ch, H, W); x2: skip (N, in_ch//2, 2H, 2W)
    x1 = jax.random.normal(k1, (2, in_ch, 8, 8), jnp.float32)
    x2 = jax.random.normal(k2, (2, in_ch // 2, 16, 16), jnp.float32)

    out = jax.jit(up_forward)(params, x1, x2)
    out = jax.block_until_ready(out)

    assert out.shape == (2, out_ch, 12, 12), out.shape  # 16 -> 14 -> 12 (two valid 3x3)
    assert bool(jnp.all(jnp.isfinite(out)))
    print("KERNEL_OK")
</pallas_src>

<mosaic_0001>
module attributes {stable_mosaic.version = 11 : i64} {
  func.func @_mm_bias_kernel(%arg0: i32, %arg1: memref<128x128xbf16, #tpu.memory_space<vmem>>, %arg2: memref<128x128xbf16, #tpu.memory_space<vmem>>, %arg3: memref<1x128xf32, #tpu.memory_space<vmem>>, %arg4: memref<128x128xbf16, #tpu.memory_space<vmem>>) attributes {dimension_semantics = [#tpu.dimension_semantics<parallel>], iteration_bounds = array<i64: 1>, scalar_prefetch = 0 : i64, scratch_operands = 0 : i64, tpu.core_type = #tpu.core_type<tc>, window_params = [{transform_indices = @transform_0, window_bounds = array<i64: 128, 128>}, {pipeline_mode = #tpu.pipeline_mode<synchronous>, transform_indices = @transform_1, window_bounds = array<i64: 128, 128>}, {pipeline_mode = #tpu.pipeline_mode<synchronous>, transform_indices = @transform_2, window_bounds = array<i64: 1, 128>}, {transform_indices = @transform_3, window_bounds = array<i64: 128, 128>}]} {
    %c0 = arith.constant 0 : index
    %c0_0 = arith.constant 0 : index
    %0 = vector.load %arg1[%c0, %c0_0] : memref<128x128xbf16, #tpu.memory_space<vmem>>, vector<128x128xbf16>
    %c0_1 = arith.constant 0 : index
    %c0_2 = arith.constant 0 : index
    %1 = vector.load %arg2[%c0_1, %c0_2] : memref<128x128xbf16, #tpu.memory_space<vmem>>, vector<128x128xbf16>
    %cst = arith.constant dense<0.000000e+00> : vector<128x128xf32>
    %2 = tpu.matmul %0, %1, %cst {dimension_numbers = #tpu.dot_dimension_numbers<[1], [0], [0], [1], [0, 0, 1, 1], [], []>} : vector<128x128xbf16>, vector<128x128xbf16>, vector<128x128xf32> -> vector<128x128xf32>
    %c0_3 = arith.constant 0 : index
    %c0_4 = arith.constant 0 : index
    %3 = vector.load %arg3[%c0_3, %c0_4] : memref<1x128xf32, #tpu.memory_space<vmem>>, vector<1x128xf32>
    %4 = vector.broadcast %3 : vector<1x128xf32> to vector<128x128xf32>
    %5 = arith.addf %2, %4 : vector<128x128xf32>
    %6 = arith.truncf %5 : vector<128x128xf32> to vector<128x128xbf16>
    %c0_5 = arith.constant 0 : index
    %c0_6 = arith.constant 0 : index
    %7 = vector.load %arg4[%c0_5, %c0_6] : memref<128x128xbf16, #tpu.memory_space<vmem>>, vector<128x128xbf16>
    tpu.vector_store %arg4[%c0_5, %c0_6], %6 {strides = array<i32>} : memref<128x128xbf16, #tpu.memory_space<vmem>>, vector<128x128xbf16>,
    return
  }
  func.func @transform_0(%arg0: i32) -> (i32, i32) {
    %c0_i32 = arith.constant 0 : i32
    %c0_i32_0 = arith.constant 0 : i32
    return %arg0, %c0_i32 : i32, i32
  }
  func.func @transform_1(%arg0: i32) -> (i32, i32) {
    %c0_i32 = arith.constant 0 : i32
    %c0_i32_0 = arith.constant 0 : i32
    %c0_i32_1 = arith.constant 0 : i32
    return %c0_i32, %c0_i32_0 : i32, i32
  }
  func.func @transform_2(%arg0: i32) -> (i32, i32) {
    %c0_i32 = arith.constant 0 : i32
    %c0_i32_0 = arith.constant 0 : i32
    %c0_i32_1 = arith.constant 0 : i32
    return %c0_i32, %c0_i32_0 : i32, i32
  }
  func.func @transform_3(%arg0: i32) -> (i32, i32) {
    %c0_i32 = arith.constant 0 : i32
    %c0_i32_0 = arith.constant 0 : i32
    return %arg0, %c0_i32 : i32, i32
  }
}

module attributes {stable_mosaic.version = 11 : i64} {
  func.func @_bn_relu_kernel(%arg0: i32, %arg1: memref<128x128xf32, #tpu.memory_space<vmem>>, %arg2: memref<1x128xf32, #tpu.memory_space<vmem>>, %arg3: memref<1x128xf32, #tpu.memory_space<vmem>>, %arg4: memref<128x128xbf16, #tpu.memory_space<vmem>>) attributes {dimension_semantics = [#tpu.dimension_semantics<parallel>], iteration_bounds = array<i64: 4>, scalar_prefetch = 0 : i64, scratch_operands = 0 : i64, tpu.core_type = #tpu.core_type<tc>, window_params = [{transform_indices = @transform_0, window_bounds = array<i64: 128, 128>}, {pipeline_mode = #tpu.pipeline_mode<synchronous>, transform_indices = @transform_1, window_bounds = array<i64: 1, 128>}, {pipeline_mode = #tpu.pipeline_mode<synchronous>, transform_indices = @transform_2, window_bounds = array<i64: 1, 128>}, {transform_indices = @transform_3, window_bounds = array<i64: 128, 128>}]} {
    %c0 = arith.constant 0 : index
    %c0_0 = arith.constant 0 : index
    %0 = vector.load %arg1[%c0, %c0_0] : memref<128x128xf32, #tpu.memory_space<vmem>>, vector<128x128xf32>
    %c0_1 = arith.constant 0 : index
    %c0_2 = arith.constant 0 : index
    %1 = vector.load %arg2[%c0_1, %c0_2] : memref<1x128xf32, #tpu.memory_space<vmem>>, vector<1x128xf32>
    %2 = vector.broadcast %1 : vector<1x128xf32> to vector<128x128xf32>
    %3 = arith.mulf %0, %2 : vector<128x128xf32>
    %c0_3 = arith.constant 0 : index
    %c0_4 = arith.constant 0 : index
    %4 = vector.load %arg3[%c0_3, %c0_4] : memref<1x128xf32, #tpu.memory_space<vmem>>, vector<1x128xf32>
    %5 = vector.broadcast %4 : vector<1x128xf32> to vector<128x128xf32>
    %6 = arith.addf %3, %5 : vector<128x128xf32>
    %cst = arith.constant 0.000000e+00 : f32
    %7 = vector.broadcast %cst : f32 to vector<128x128xf32>
    %8 = arith.maximumf %6, %7 : vector<128x128xf32>
    %9 = arith.truncf %8 : vector<128x128xf32> to vector<128x128xbf16>
    %c0_5 = arith.constant 0 : index
    %c0_6 = arith.constant 0 : index
    %10 = vector.load %arg4[%c0_5, %c0_6] : memref<128x128xbf16, #tpu.memory_space<vmem>>, vector<128x128xbf16>
    tpu.vector_store %arg4[%c0_5, %c0_6], %9 {strides = array<i32>} : memref<128x128xbf16, #tpu.memory_space<vmem>>, vector<128x128xbf16>,
    return
  }
  func.func @transform_0(%arg0: i32) -> (i32, i32) {
    %c0_i32 = arith.constant 0 : i32
    %c0_i32_0 = arith.constant 0 : i32
    return %arg0, %c0_i32 : i32, i32
  }
  func.func @transform_1(%arg0: i32) -> (i32, i32) {
    %c0_i32 = arith.constant 0 : i32
    %c0_i32_0 = arith.constant 0 : i32
    %c0_i32_1 = arith.constant 0 : i32
    return %c0_i32, %c0_i32_0 : i32, i32
  }
  func.func @transform_2(%arg0: i32) -> (i32, i32) {
    %c0_i32 = arith.constant 0 : i32
    %c0_i32_0 = arith.constant 0 : i32
    %c0_i32_1 = arith.constant 0 : i32
    return %c0_i32, %c0_i32_0 : i32, i32
  }
  func.func @transform_3(%arg0: i32) -> (i32, i32) {
    %c0_i32 = arith.constant 0 : i32
    %c0_i32_0 = arith.constant 0 : i32
    return %arg0, %c0_i32 : i32, i32
  }
}

module attributes {stable_mosaic.version = 11 : i64} {
  func.func @_mm_bias_stats_kernel(%arg0: i32, %arg1: memref<128x128xbf16, #tpu.memory_space<vmem>>, %arg2: memref<128x128xbf16, #tpu.memory_space<vmem>>, %arg3: memref<1x128xf32, #tpu.memory_space<vmem>>, %arg4: memref<128x128xf32, #tpu.memory_space<vmem>>, %arg5: memref<1x2x128xf32, #tpu.memory_space<vmem>>) attributes {dimension_semantics = [#tpu.dimension_semantics<parallel>], iteration_bounds = array<i64: 4>, scalar_prefetch = 0 : i64, scratch_operands = 0 : i64, tpu.core_type = #tpu.core_type<tc>, window_params = [{transform_indices = @transform_0, window_bounds = array<i64: 128, 128>}, {pipeline_mode = #tpu.pipeline_mode<synchronous>, transform_indices = @transform_1, window_bounds = array<i64: 128, 128>}, {pipeline_mode = #tpu.pipeline_mode<synchronous>, transform_indices = @transform_2, window_bounds = array<i64: 1, 128>}, {transform_indices = @transform_3, window_bounds = array<i64: 128, 128>}, {transform_indices = @transform_4, window_bounds = array<i64: 1, 2, 128>}]} {
    %c0 = arith.constant 0 : index
    %c0_0 = arith.constant 0 : index
    %0 = vector.load %arg1[%c0, %c0_0] : memref<128x128xbf16, #tpu.memory_space<vmem>>, vector<128x128xbf16>
    %c0_1 = arith.constant 0 : index
    %c0_2 = arith.constant 0 : index
    %1 = vector.load %arg2[%c0_1, %c0_2] : memref<128x128xbf16, #tpu.memory_space<vmem>>, vector<128x128xbf16>
    %cst = arith.constant dense<0.000000e+00> : vector<128x128xf32>
    %2 = tpu.matmul %0, %1, %cst {dimension_numbers = #tpu.dot_dimension_numbers<[1], [0], [0], [1], [0, 0, 1, 1], [], []>} : vector<128x128xbf16>, vector<128x128xbf16>, vector<128x128xf32> -> vector<128x128xf32>
    %c0_3 = arith.constant 0 : index
    %c0_4 = arith.constant 0 : index
    %3 = vector.load %arg3[%c0_3, %c0_4] : memref<1x128xf32, #tpu.memory_space<vmem>>, vector<1x128xf32>
    %4 = vector.broadcast %3 : vector<1x128xf32> to vector<128x128xf32>
    %5 = arith.addf %2, %4 : vector<128x128xf32>
    %c0_5 = arith.constant 0 : index
    %c0_6 = arith.constant 0 : index
    %6 = vector.load %arg4[%c0_5, %c0_6] : memref<128x128xf32, #tpu.memory_space<vmem>>, vector<128x128xf32>
    tpu.vector_store %arg4[%c0_5, %c0_6], %5 {strides = array<i32>} : memref<128x128xf32, #tpu.memory_space<vmem>>, vector<128x128xf32>,
    %c128_i32 = arith.constant 128 : i32
    %7 = arith.muli %arg0, %c128_i32 : i32
    %8 = tpu.iota {dimensions = array<i32: 0>} : vector<128x1xi32>
    %9 = vector.broadcast %7 : i32 to vector<128x1xi32>
    %10 = arith.addi %9, %8 : vector<128x1xi32>
    %c392_i32 = arith.constant 392 : i32
    %11 = vector.broadcast %c392_i32 : i32 to vector<128x1xi32>
    %12 = arith.cmpi slt, %10, %11 : vector<128x1xi32>
    %cst_7 = arith.constant 0.000000e+00 : f32
    %13 = vector.shape_cast %12 : vector<128x1xi1> to vector<128x1xi1>
    %14 = vector.broadcast %13 : vector<128x1xi1> to vector<128x128xi1>
    %15 = vector.broadcast %cst_7 : f32 to vector<128x128xf32>
    %16 = arith.select %14, %5, %15 : vector<128x128xi1>, vector<128x128xf32>
    %cst_8 = arith.constant dense<0.000000e+00> : vector<128xf32>
    %17 = vector.multi_reduction <add>, %16, %cst_8 [0] : vector<128x128xf32> to vector<128xf32>
    %18 = vector.shape_cast %17 : vector<128xf32> to vector<1x128xf32>
    %19 = arith.mulf %16, %5 : vector<128x128xf32>
    %cst_9 = arith.constant dense<0.000000e+00> : vector<128xf32>
    %20 = vector.multi_reduction <add>, %19, %cst_9 [0] : vector<128x128xf32> to vector<128xf32>
    %21 = vector.shape_cast %20 : vector<128xf32> to vector<1x128xf32>
    %22 = tpu.concatenate %18, %21 in 0 : vector<1x128xf32>, vector<1x128xf32> -> vector<2x128xf32>
    %c0_10 = arith.constant 0 : index
    %c0_11 = arith.constant 0 : index
    %c0_12 = arith.constant 0 : index
    %23 = vector.load %arg5[%c0_10, %c0_11, %c0_12] : memref<1x2x128xf32, #tpu.memory_space<vmem>>, vector<1x2x128xf32>
    %24 = vector.shape_cast %23 : vector<1x2x128xf32> to vector<2x128xf32>
    %25 = vector.shape_cast %22 : vector<2x128xf32> to vector<1x2x128xf32>
    tpu.vector_store %arg5[%c0_10, %c0_11, %c0_12], %25 {strides = array<i32>} : memref<1x2x128xf32, #tpu.memory_space<vmem>>, vector<1x2x128xf32>,
    return
  }
  func.func @transform_0(%arg0: i32) -> (i32, i32) {
    %c0_i32 = arith.constant 0 : i32
    %c0_i32_0 = arith.constant 0 : i32
    return %arg0, %c0_i32 : i32, i32
  }
  func.func @transform_1(%arg0: i32) -> (i32, i32) {
    %c0_i32 = arith.constant 0 : i32
    %c0_i32_0 = arith.constant 0 : i32
    %c0_i32_1 = arith.constant 0 : i32
    return %c0_i32, %c0_i32_0 : i32, i32
  }
  func.func @transform_2(%arg0: i32) -> (i32, i32) {
    %c0_i32 = arith.constant 0 : i32
    %c0_i32_0 = arith.constant 0 : i32
    %c0_i32_1 = arith.constant 0 : i32
    return %c0_i32, %c0_i32_0 : i32, i32
  }
  func.func @transform_3(%arg0: i32) -> (i32, i32) {
    %c0_i32 = arith.constant 0 : i32
    %c0_i32_0 = arith.constant 0 : i32
    return %arg0, %c0_i32 : i32, i32
  }
  func.func @transform_4(%arg0: i32) -> (i32, i32, i32) {
    %c0_i32 = arith.constant 0 : i32
    %c0_i32_0 = arith.constant 0 : i32
    %c0_i32_1 = arith.constant 0 : i32
    return %arg0, %c0_i32, %c0_i32_0 : i32, i32, i32
  }
}

module attributes {stable_mosaic.version = 11 : i64} {
  func.func @_bn_relu_kernel(%arg0: i32, %arg1: memref<128x128xf32, #tpu.memory_space<vmem>>, %arg2: memref<1x128xf32, #tpu.memory_space<vmem>>, %arg3: memref<1x128xf32, #tpu.memory_space<vmem>>, %arg4: memref<128x128xf32, #tpu.memory_space<vmem>>) attributes {dimension_semantics = [#tpu.dimension_semantics<parallel>], iteration_bounds = array<i64: 3>, scalar_prefetch = 0 : i64, scratch_operands = 0 : i64, tpu.core_type = #tpu.core_type<tc>, window_params = [{transform_indices = @transform_0, window_bounds = array<i64: 128, 128>}, {pipeline_mode = #tpu.pipeline_mode<synchronous>, transform_indices = @transform_1, window_bounds = array<i64: 1, 128>}, {pipeline_mode = #tpu.pipeline_mode<synchronous>, transform_indices = @transform_2, window_bounds = array<i64: 1, 128>}, {transform_indices = @transform_3, window_bounds = array<i64: 128, 128>}]} {
    %c0 = arith.constant 0 : index
    %c0_0 = arith.constant 0 : index
    %0 = vector.load %arg1[%c0, %c0_0] : memref<128x128xf32, #tpu.memory_space<vmem>>, vector<128x128xf32>
    %c0_1 = arith.constant 0 : index
    %c0_2 = arith.constant 0 : index
    %1 = vector.load %arg2[%c0_1, %c0_2] : memref<1x128xf32, #tpu.memory_space<vmem>>, vector<1x128xf32>
    %2 = vector.broadcast %1 : vector<1x128xf32> to vector<128x128xf32>
    %3 = arith.mulf %0, %2 : vector<128x128xf32>
    %c0_3 = arith.constant 0 : index
    %c0_4 = arith.constant 0 : index
    %4 = vector.load %arg3[%c0_3, %c0_4] : memref<1x128xf32, #tpu.memory_space<vmem>>, vector<1x128xf32>
    %5 = vector.broadcast %4 : vector<1x128xf32> to vector<128x128xf32>
    %6 = arith.addf %3, %5 : vector<128x128xf32>
    %cst = arith.constant 0.000000e+00 : f32
    %7 = vector.broadcast %cst : f32 to vector<128x128xf32>
    %8 = arith.maximumf %6, %7 : vector<128x128xf32>
    %c0_5 = arith.constant 0 : index
    %c0_6 = arith.constant 0 : index
    %9 = vector.load %arg4[%c0_5, %c0_6] : memref<128x128xf32, #tpu.memory_space<vmem>>, vector<128x128xf32>
    tpu.vector_store %arg4[%c0_5, %c0_6], %8 {strides = array<i32>} : memref<128x128xf32, #tpu.memory_space<vmem>>, vector<128x128xf32>,
    return
  }
  func.func @transform_0(%arg0: i32) -> (i32, i32) {
    %c0_i32 = arith.constant 0 : i32
    %c0_i32_0 = arith.constant 0 : i32
    return %arg0, %c0_i32 : i32, i32
  }
  func.func @transform_1(%arg0: i32) -> (i32, i32) {
    %c0_i32 = arith.constant 0 : i32
    %c0_i32_0 = arith.constant 0 : i32
    %c0_i32_1 = arith.constant 0 : i32
    return %c0_i32, %c0_i32_0 : i32, i32
  }
  func.func @transform_2(%arg0: i32) -> (i32, i32) {
    %c0_i32 = arith.constant 0 : i32
    %c0_i32_0 = arith.constant 0 : i32
    %c0_i32_1 = arith.constant 0 : i32
    return %c0_i32, %c0_i32_0 : i32, i32
  }
  func.func @transform_3(%arg0: i32) -> (i32, i32) {
    %c0_i32 = arith.constant 0 : i32
    %c0_i32_0 = arith.constant 0 : i32
    return %arg0, %c0_i32 : i32, i32
  }
}

module attributes {stable_mosaic.version = 11 : i64} {
  func.func @_mm_bias_stats_kernel(%arg0: i32, %arg1: memref<128x128xbf16, #tpu.memory_space<vmem>>, %arg2: memref<128x128xbf16, #tpu.memory_space<vmem>>, %arg3: memref<1x128xf32, #tpu.memory_space<vmem>>, %arg4: memref<128x128xf32, #tpu.memory_space<vmem>>, %arg5: memref<1x2x128xf32, #tpu.memory_space<vmem>>) attributes {dimension_semantics = [#tpu.dimension_semantics<parallel>], iteration_bounds = array<i64: 3>, scalar_prefetch = 0 : i64, scratch_operands = 0 : i64, tpu.core_type = #tpu.core_type<tc>, window_params = [{transform_indices = @transform_0, window_bounds = array<i64: 128, 128>}, {pipeline_mode = #tpu.pipeline_mode<synchronous>, transform_indices = @transform_1, window_bounds = array<i64: 128, 128>}, {pipeline_mode = #tpu.pipeline_mode<synchronous>, transform_indices = @transform_2, window_bounds = array<i64: 1, 128>}, {transform_indices = @transform_3, window_bounds = array<i64: 128, 128>}, {transform_indices = @transform_4, window_bounds = array<i64: 1, 2, 128>}]} {
    %c0 = arith.constant 0 : index
    %c0_0 = arith.constant 0 : index
    %0 = vector.load %arg1[%c0, %c0_0] : memref<128x128xbf16, #tpu.memory_space<vmem>>, vector<128x128xbf16>
    %c0_1 = arith.constant 0 : index
    %c0_2 = arith.constant 0 : index
    %1 = vector.load %arg2[%c0_1, %c0_2] : memref<128x128xbf16, #tpu.memory_space<vmem>>, vector<128x128xbf16>
    %cst = arith.constant dense<0.000000e+00> : vector<128x128xf32>
    %2 = tpu.matmul %0, %1, %cst {dimension_numbers = #tpu.dot_dimension_numbers<[1], [0], [0], [1], [0, 0, 1, 1], [], []>} : vector<128x128xbf16>, vector<128x128xbf16>, vector<128x128xf32> -> vector<128x128xf32>
    %c0_3 = arith.constant 0 : index
    %c0_4 = arith.constant 0 : index
    %3 = vector.load %arg3[%c0_3, %c0_4] : memref<1x128xf32, #tpu.memory_space<vmem>>, vector<1x128xf32>
    %4 = vector.broadcast %3 : vector<1x128xf32> to vector<128x128xf32>
    %5 = arith.addf %2, %4 : vector<128x128xf32>
    %c0_5 = arith.constant 0 : index
    %c0_6 = arith.constant 0 : index
    %6 = vector.load %arg4[%c0_5, %c0_6] : memref<128x128xf32, #tpu.memory_space<vmem>>, vector<128x128xf32>
    tpu.vector_store %arg4[%c0_5, %c0_6], %5 {strides = array<i32>} : memref<128x128xf32, #tpu.memory_space<vmem>>, vector<128x128xf32>,
    %c128_i32 = arith.constant 128 : i32
    %7 = arith.muli %arg0, %c128_i32 : i32
    %8 = tpu.iota {dimensions = array<i32: 0>} : vector<128x1xi32>
    %9 = vector.broadcast %7 : i32 to vector<128x1xi32>
    %10 = arith.addi %9, %8 : vector<128x1xi32>
    %c288_i32 = arith.constant 288 : i32
    %11 = vector.broadcast %c288_i32 : i32 to vector<128x1xi32>
    %12 = arith.cmpi slt, %10, %11 : vector<128x1xi32>
    %cst_7 = arith.constant 0.000000e+00 : f32
    %13 = vector.shape_cast %12 : vector<128x1xi1> to vector<128x1xi1>
    %14 = vector.broadcast %13 : vector<128x1xi1> to vector<128x128xi1>
    %15 = vector.broadcast %cst_7 : f32 to vector<128x128xf32>
    %16 = arith.select %14, %5, %15 : vector<128x128xi1>, vector<128x128xf32>
    %cst_8 = arith.constant dense<0.000000e+00> : vector<128xf32>
    %17 = vector.multi_reduction <add>, %16, %cst_8 [0] : vector<128x128xf32> to vector<128xf32>
    %18 = vector.shape_cast %17 : vector<128xf32> to vector<1x128xf32>
    %19 = arith.mulf %16, %5 : vector<128x128xf32>
    %cst_9 = arith.constant dense<0.000000e+00> : vector<128xf32>
    %20 = vector.multi_reduction <add>, %19, %cst_9 [0] : vector<128x128xf32> to vector<128xf32>
    %21 = vector.shape_cast %20 : vector<128xf32> to vector<1x128xf32>
    %22 = tpu.concatenate %18, %21 in 0 : vector<1x128xf32>, vector<1x128xf32> -> vector<2x128xf32>
    %c0_10 = arith.constant 0 : index
    %c0_11 = arith.constant 0 : index
    %c0_12 = arith.constant 0 : index
    %23 = vector.load %arg5[%c0_10, %c0_11, %c0_12] : memref<1x2x128xf32, #tpu.memory_space<vmem>>, vector<1x2x128xf32>
    %24 = vector.shape_cast %23 : vector<1x2x128xf32> to vector<2x128xf32>
    %25 = vector.shape_cast %22 : vector<2x128xf32> to vector<1x2x128xf32>
    tpu.vector_store %arg5[%c0_10, %c0_11, %c0_12], %25 {strides = array<i32>} : memref<1x2x128xf32, #tpu.memory_space<vmem>>, vector<1x2x128xf32>,
    return
  }
  func.func @transform_0(%arg0: i32) -> (i32, i32) {
    %c0_i32 = arith.constant 0 : i32
    %c0_i32_0 = arith.constant 0 : i32
    return %arg0, %c0_i32 : i32, i32
  }
  func.func @transform_1(%arg0: i32) -> (i32, i32) {
    %c0_i32 = arith.constant 0 : i32
    %c0_i32_0 = arith.constant 0 : i32
    %c0_i32_1 = arith.constant 0 : i32
    return %c0_i32, %c0_i32_0 : i32, i32
  }
  func.func @transform_2(%arg0: i32) -> (i32, i32) {
    %c0_i32 = arith.constant 0 : i32
    %c0_i32_0 = arith.constant 0 : i32
    %c0_i32_1 = arith.constant 0 : i32
    return %c0_i32, %c0_i32_0 : i32, i32
  }
  func.func @transform_3(%arg0: i32) -> (i32, i32) {
    %c0_i32 = arith.constant 0 : i32
    %c0_i32_0 = arith.constant 0 : i32
    return %arg0, %c0_i32 : i32, i32
  }
  func.func @transform_4(%arg0: i32) -> (i32, i32, i32) {
    %c0_i32 = arith.constant 0 : i32
    %c0_i32_0 = arith.constant 0 : i32
    %c0_i32_1 = arith.constant 0 : i32
    return %arg0, %c0_i32, %c0_i32_0 : i32, i32, i32
  }
}

</mosaic_0001>

<bundles_post_ra>
// kernel: tile.8
= control target key start
LH: loop header
LB: loop body
LE: loop exit
PB: predicated region body
PF: predicated region fallthrough
CT: control target
= control target key end

     0   :  { %s22_s0 = inlined_call_operand.vmem [shape: f32[4], index: 0, kind: input, shape index: {}]   ;;  %s23_s1 = inlined_call_operand.vmem [shape: f32[4,4], index: 1, kind: output, shape index: {}]  }
   0x1   :  { %v4_v0 = vld [vmem:[%s22_s0] ss:$0 sm:$0xff] }
   0x2   :  { %5 = vst [vmem:[%s23_s1] sm:$0xf] %v4_v0 }

// kernel: tile.9
= control target key start
LH: loop header
LB: loop body
LE: loop exit
PB: predicated region body
PF: predicated region fallthrough
CT: control target
= control target key end

     0   :  { %vm8_vm0 = vcmask 31744   ;;  %s40_s8 = smov 4   ;;  %s41_s9 = smov 8   ;;  %vm14_vm1 = vcmask 130144   ;;  %vm20_vm2 = vcmask 97344   ;;  %vm26_vm3 = vcmask 64544   ;;  %s58_s0 = inlined_call_operand.vmem [shape: f32[4,4], index: 0, kind: input, shape index: {}]   ;;  %s59_s1 = inlined_call_operand.vmem [shape: f32[16], index: 1, kind: output, shape index: {}]  }
   0x1   :  { %v5_v0 = vld [vmem:[%s58_s0] sm:$0xf]  ;;  %s39_s0 = smov 12  }
   0x2   :  { %6 = vst [vmem:[#allocation1] sm:$0xf] %v5_v0 }
   0x9   :  { %v11_v1 = vld [vmem:[#allocation1 + $0x3] sm:$0x1]   ;;  %v23_v2 = vld [vmem:[#allocation1 + $0x1] sm:$0x1]   ;;  %v7_v3 = vld [vmem:[#allocation1] sm:$0x1]  }
   0xa   :  { %12 = vrot.lane.b32.xlu0 %v11_v1, %s39_s0  ;;  %24 = vrot.lane.b32.xlu1 %v23_v2, %s40_s8  ;;  %v17_v4 = vld [vmem:[#allocation1 + $0x2] sm:$0x1]   ;;  %9 = vst.msk [vmem:[#allocation0] sm:$0x1] %vm8_vm0, %v7_v3  }
   0xe   :  { %18 = vrot.lane.b32.xlu0 %v17_v4, %s41_s9 }
  0x7c   :  { %v13_v5 = vpop.permute.xlu0 %12   ;;  %v25_v6 = vpop.permute.xlu1 %24  }
  0x7d   :  { %15 = vst.msk [vmem:[#allocation0] sm:$0x1] %vm14_vm1, %v13_v5  }
  0x80   :  { %v19_v7 = vpop.permute.xlu0 %18  }
  0x81   :  { %21 = vst.msk [vmem:[#allocation0] sm:$0x1] %vm20_vm2, %v19_v7  }
  0x82   :  { %27 = vst.msk [vmem:[#allocation0] sm:$0x1] %vm26_vm3, %v25_v6  }
  0x89   :  { %v32_v8 = vld [vmem:[#allocation0] sm:$0x1] }
  0x8a   :  { %35 = vst [vmem:[%s59_s1] sm:$0x1] %v32_v8 }

// kernel: up_forward.5
= control target key start
LH: loop header
LB: loop body
LE: loop exit
PB: predicated region body
PF: predicated region fallthrough
CT: control target
= control target key end

     0   :  { %s602_s1 = inlined_call_operand.vmem [shape: bf16[128,128], index: 1, kind: input, shape index: {}]   ;;  %s603_s0 = inlined_call_operand.vmem [shape: bf16[128,128], index: 0, kind: input, shape index: {}]   ;;  %s604_s2 = inlined_call_operand.vmem [shape: f32[1,128], index: 2, kind: input, shape index: {}]   ;;  %s605_s3 = inlined_call_operand.vmem [shape: bf16[128,128], index: 3, kind: output, shape index: {}]  }
   0x1   :  { %v491_v0 = vld [vmem:[%s602_s1 + $0x38] sm:$0xff]   ;;  %v492_v1 = vld [vmem:[%s602_s1 + $0x30] sm:$0xff]   ;;  %v493_v2 = vld [vmem:[%s602_s1 + $0x28] sm:$0xff]  }
   0x2   :  { %443 = vmatprep.subr.bf16.mxu0 %v491_v0  ;;  %475 = vmatprep.subr.bf16.mxu1 %v491_v0  ;;  %v494_v3 = vld [vmem:[%s602_s1 + $0x20] sm:$0xff]   ;;  %v495_v6 = vld [vmem:[%s602_s1 + $0x18] sm:$0xff]   ;;  %v496_v7 = vld [vmem:[%s602_s1 + $0x10] sm:$0xff]  }
   0x3   :  { %444 = vmatpush3.bf16.msra.mxu0 %v491_v0  ;;  %483 = vmatpush3.bf16.msra.mxu1 %v491_v0  ;;  %v499_v4 = vld [vmem:[%s603_s0] sm:$0xff]   ;;  %v497_v8 = vld [vmem:[%s602_s1 + $0x8] sm:$0xff]   ;;  %v503_v12 = vld [vmem:[%s603_s0 + $0x10] sm:$0xff]  }
   0x4   :  { %445 = vmatprep.subr.bf16.mxu0 %v492_v1  ;;  %476 = vmatprep.subr.bf16.mxu1 %v492_v1  ;;  %v500_v5 = vld [vmem:[%s603_s0 + $0x20] sm:$0xff]   ;;  %v501_v10 = vld [vmem:[%s603_s0 + $0x8] sm:$0xff]   ;;  %v504_v13 = vld [vmem:[%s603_s0 + $0x30] sm:$0xff]  }
   0x5   :  { %459 = vmatprep.mubr.bf16.mxu0 %v499_v4  ;;  %467 = vmatprep.mubr.bf16.mxu1 %v500_v5  ;;  %v498_v9 = vld [vmem:[%s602_s1] sm:$0xff]   ;;  %v502_v11 = vld [vmem:[%s603_s0 + $0x28] sm:$0xff]   ;;  %v505_v14 = vld [vmem:[%s603_s0 + $0x18] sm:$0xff]  }
   0x6   :  { %v506_v15 = vld [vmem:[%s603_s0 + $0x38] sm:$0xff]   ;;  %v331_v18 = vld [vmem:[%s604_s2] ss:$0 sm:$0xff] }
   0x7   :  { %446 = vmatpush3.bf16.msra.mxu0 %v492_v1  ;;  %484 = vmatpush3.bf16.msra.mxu1 %v492_v1 }
   0x8   :  { %447 = vmatprep.subr.bf16.mxu0 %v493_v2  ;;  %477 = vmatprep.subr.bf16.mxu1 %v493_v2 }
   0xb   :  { %448 = vmatpush3.bf16.msra.mxu0 %v493_v2  ;;  %485 = vmatpush3.bf16.msra.mxu1 %v493_v2 }
   0xc   :  { %449 = vmatprep.subr.bf16.mxu0 %v494_v3  ;;  %478 = vmatprep.subr.bf16.mxu1 %v494_v3 }
   0xf   :  { %450 = vmatpush3.bf16.msra.mxu0 %v494_v3  ;;  %486 = vmatpush3.bf16.msra.mxu1 %v494_v3 }
  0x10   :  { %451 = vmatprep.subr.bf16.mxu0 %v495_v6  ;;  %479 = vmatprep.subr.bf16.mxu1 %v495_v6 }
  0x13   :  { %452 = vmatpush3.bf16.msra.mxu0 %v495_v6  ;;  %487 = vmatpush3.bf16.msra.mxu1 %v495_v6 }
  0x14   :  { %453 = vmatprep.subr.bf16.mxu0 %v496_v7  ;;  %480 = vmatprep.subr.bf16.mxu1 %v496_v7 }
  0x17   :  { %454 = vmatpush3.bf16.msra.mxu0 %v496_v7  ;;  %488 = vmatpush3.bf16.msra.mxu1 %v496_v7 }
  0x18   :  { %455 = vmatprep.subr.bf16.mxu0 %v497_v8  ;;  %481 = vmatprep.subr.bf16.mxu1 %v497_v8 }
  0x1b   :  { %456 = vmatpush3.bf16.msra.mxu0 %v497_v8  ;;  %489 = vmatpush3.bf16.msra.mxu1 %v497_v8 }
  0x1c   :  { %457 = vmatprep.subr.bf16.mxu0 %v498_v9  ;;  %482 = vmatprep.subr.bf16.mxu1 %v498_v9 }
  0x1f   :  { %458 = vmatpush3.bf16.msra.mxu0 %v498_v9  ;;  %490 = vmatpush3.bf16.msra.mxu1 %v498_v9 }
  0x22   :  { %460 = vmatmul.mubr.bf16.vlgmr.msra.gmra.mxu0 %v501_v10  ;;  %468 = vmatmul.mubr.bf16.vlgmr.msra.gmra.mxu1 %v502_v11 }
  0x23   :  { %463 = vmatprep.mubr.bf16.mxu0 %v503_v12  ;;  %471 = vmatprep.mubr.bf16.mxu1 %v504_v13 }
  0x2a   :  { %464 = vmatmul.mubr.bf16.gmra.mxu0 %v505_v14  ;;  %472 = vmatmul.mubr.bf16.gmra.mxu1 %v506_v15 }
  0xe2   :  { %v461_v16 = vpop.f32.mrf.mxu0  ;;  %v469_v17 = vpop.f32.mrf.mxu1 }
  0xe3   :  { %v193_v23 = vadd.f32 %v461_v16, %v331_v18  ;;  %v225_v24 = vadd.f32 %v469_v17, %v331_v18 }
  0xe4   :  { %v184_v19 = vpop.f32.mrf.mxu0  ;;  %v216_v20 = vpop.f32.mrf.mxu1 }
  0xe5   :  { %v185_v27 = vadd.f32 %v331_v18, %v184_v19  ;;  %v217_v28 = vadd.f32 %v331_v18, %v216_v20 }
  0xe6   :  { %v462_v21 = vpop.f32.mrf.mxu0  ;;  %v470_v22 = vpop.f32.mrf.mxu1 }
  0xe7   :  { %v196_v25 = vadd.f32 %v462_v21, %v331_v18  ;;  %v228_v26 = vadd.f32 %v470_v22, %v331_v18 }
  0xe8   :  { %v187_v29 = vpop.f32.mrf.mxu0  ;;  %v219_v30 = vpop.f32.mrf.mxu1 }
  0xe9   :  { %v388_v31 = vpack.c.bf16 %v196_v25, %v193_v23  ;;  %v408_v32 = vpack.c.bf16 %v228_v26, %v225_v24  ;;  %v188_v33 = vadd.f32 %v331_v18, %v187_v29  ;;  %v220_v34 = vadd.f32 %v331_v18, %v219_v30 }
  0xea   :  { %v465_v35 = vpop.f32.mrf.mxu0  ;;  %v473_v36 = vpop.f32.mrf.mxu1 }
  0xeb   :  { %420 = vst [vmem:[%s605_s3 + $0x8] sm:$0xff] %v388_v31   ;;  %424 = vst [vmem:[%s605_s3 + $0x28] sm:$0xff] %v408_v32   ;;  %v383_v37 = vpack.c.bf16 %v188_v33, %v185_v27  ;;  %v403_v38 = vpack.c.bf16 %v220_v34, %v217_v28  ;;  %v209_v43 = vadd.f32 %v465_v35, %v331_v18 }
  0xec   :  { %v200_v39 = vpop.f32.mrf.mxu0  ;;  %v232_v40 = vpop.f32.mrf.mxu1  ;;  %v241_v44 = vadd.f32 %v473_v36, %v331_v18 }
  0xed   :  { %384 = vst [vmem:[%s605_s3] sm:$0xff] %v383_v37   ;;  %423 = vst [vmem:[%s605_s3 + $0x20] sm:$0xff] %v403_v38   ;;  %v201_v47 = vadd.f32 %v331_v18, %v200_v39  ;;  %v233_v48 = vadd.f32 %v331_v18, %v232_v40 }
  0xee   :  { %v466_v41 = vpop.f32.mrf.mxu0  ;;  %v474_v42 = vpop.f32.mrf.mxu1 }
  0xef   :  { %v212_v45 = vadd.f32 %v466_v41, %v331_v18  ;;  %v244_v46 = vadd.f32 %v474_v42, %v331_v18 }
  0xf0   :  { %v203_v49 = vpop.f32.mrf.mxu0  ;;  %v235_v50 = vpop.f32.mrf.mxu1 }
  0xf1   :  { %v398_v51 = vpack.c.bf16 %v212_v45, %v209_v43  ;;  %v418_v52 = vpack.c.bf16 %v244_v46, %v241_v44  ;;  %v204_v53 = vadd.f32 %v331_v18, %v203_v49  ;;  %v236_v54 = vadd.f32 %v331_v18, %v235_v50 }
  0xf3   :  { %422 = vst [vmem:[%s605_s3 + $0x18] sm:$0xff] %v398_v51   ;;  %426 = vst [vmem:[%s605_s3 + $0x38] sm:$0xff] %v418_v52   ;;  %v393_v55 = vpack.c.bf16 %v204_v53, %v201_v47  ;;  %v413_v56 = vpack.c.bf16 %v236_v54, %v233_v48 }
  0xf5   :  { %421 = vst [vmem:[%s605_s3 + $0x10] sm:$0xff] %v393_v55   ;;  %425 = vst [vmem:[%s605_s3 + $0x30] sm:$0xff] %v413_v56  }

// kernel: up_forward.7
= control target key start
LH: loop header
LB: loop body
LE: loop exit
PB: predicated region body
PF: predicated region fallthrough
CT: control target
= control target key end

     0   :  { %s516_s12 = smov 0   ;;  %s607_s0 = inlined_call_operand.vmem [shape: f32[512,128], index: 0, kind: input, shape index: {}]   ;;  %s608_s1 = inlined_call_operand.vmem [shape: f32[1,128], index: 1, kind: input, shape index: {}]   ;;  %s609_s2 = inlined_call_operand.vmem [shape: f32[1,128], index: 2, kind: input, shape index: {}]   ;;  %s610_s3 = inlined_call_operand.vmem [shape: bf16[512,128], index: 3, kind: output, shape index: {}]  }
   0x1 LB: > { %s388_s13 = sadd.s32 4294967295, %s494_s12   ;;  %p392_p0 = scmp.ge.s32.totalorder %s494_s12, 1  ;;  %s494_s12 = sphi %s516_s12, %s13_s12  }
   0x2   : > { %p138_p1 = scmp.lt.s32.totalorder %s494_s12, 5 }
   0x4   : > { %p139_p2 = pnand %p392_p0, %p138_p1 }
   0x5   : > { %s393_s14 = sshll.u32 (!%p139_p2), %s388_s13, 4 }
   0x6   : > { %142 = sbr.rel (%p139_p2) target bundleno = 35 (0x23), region = 32  ;;  %p163_p3 = scmp.lt.s32.totalorder (!%p139_p2), %s393_s14, 63 }
   0xb   : > { %s612_s14 = smov (!%p163_p3, %s393_s14), 63  ;;  %v530_v0 = vld [vmem:[%s608_s1] ss:$0 sm:$0xff] }
   0xc   : > { %s394_s15 = sshll.u32 %s612_s14, 3  ;;  %v540_v1 = vld [vmem:[%s609_s2] ss:$0 sm:$0xff]  ;;  %s396_s23 = sshll.u32 %s612_s14, 2 }
   0xd   : > { %s535_s20 = scalar_lea.vmem %s607_s0, %s394_s15  ;;  %s572_s26 = scalar_lea.vmem %s610_s3, %s396_s23 }
   0xe   : > { %v174_v2 = vld [vmem:[%s535_s20] sm:$0xff]  ;;  %v175_v3 = vld [vmem:[%s535_s20 + $0x8] sm:$0xff]  ;;  %v176_v4 = vld [vmem:[%s535_s20 + $0x10] sm:$0xff] }
   0xf   : > { %v197_v5 = vmul.f32 %v530_v0, %v174_v2  ;;  %v198_v6 = vmul.f32 %v530_v0, %v175_v3  ;;  %v177_v7 = vld [vmem:[%s535_s20 + $0x18] sm:$0xff]  ;;  %v199_v8 = vmul.f32 %v530_v0, %v176_v4  ;;  %v178_v9 = vld [vmem:[%s535_s20 + $0x20] sm:$0xff]  ;;  %v179_v10 = vld [vmem:[%s535_s20 + $0x28] sm:$0xff] }
  0x10   : > { %v200_v11 = vmul.f32 %v530_v0, %v177_v7  ;;  %v201_v12 = vmul.f32 %v530_v0, %v178_v9  ;;  %v202_v13 = vmul.f32 %v530_v0, %v179_v10  ;;  %v180_v14 = vld [vmem:[%s535_s20 + $0x30] sm:$0xff]  ;;  %v181_v15 = vld [vmem:[%s535_s20 + $0x38] sm:$0xff]  ;;  %v182_v24 = vld [vmem:[%s535_s20 + $0x40] sm:$0xff] }
  0x11   : > { %v220_v16 = vadd.f32 %v540_v1, %v197_v5  ;;  %v221_v17 = vadd.f32 %v540_v1, %v198_v6  ;;  %v222_v18 = vadd.f32 %v540_v1, %v199_v8  ;;  %v203_v19 = vmul.f32 %v530_v0, %v180_v14  ;;  %v183_v25 = vld [vmem:[%s535_s20 + $0x48] sm:$0xff]  ;;  %v184_v30 = vld [vmem:[%s535_s20 + $0x50] sm:$0xff]  ;;  %v185_v35 = vld [vmem:[%s535_s20 + $0x58] sm:$0xff] }
  0x12   : > { %v223_v20 = vadd.f32 %v540_v1, %v200_v11  ;;  %v224_v21 = vadd.f32 %v540_v1, %v201_v12  ;;  %v225_v22 = vadd.f32 %v540_v1, %v202_v13  ;;  %v204_v23 = vmul.f32 %v530_v0, %v181_v15  ;;  %v186_v36 = vld [vmem:[%s535_s20 + $0x60] sm:$0xff]  ;;  %v187_v41 = vld [vmem:[%s535_s20 + $0x68] sm:$0xff]  ;;  %v188_v42 = vld [vmem:[%s535_s20 + $0x70] sm:$0xff] }
  0x13   : > { %v236_v26 = vmax.f32 %v220_v16, 0.0  ;;  %v237_v27 = vmax.f32 %v221_v17, 0.0  ;;  %v238_v28 = vmax.f32 %v222_v18, 0.0  ;;  %v226_v29 = vadd.f32 %v540_v1, %v203_v19  ;;  %v189_v51 = vld [vmem:[%s535_s20 + $0x78] sm:$0xff] }
  0x14   : > { %v239_v31 = vmax.f32 %v223_v20, 0.0  ;;  %v240_v32 = vmax.f32 %v224_v21, 0.0  ;;  %v241_v33 = vmax.f32 %v225_v22, 0.0  ;;  %v227_v34 = vadd.f32 %v540_v1, %v204_v23 }
  0x15   : > { %v436_v37 = vpack.c.bf16 %v237_v27, %v236_v26  ;;  %v242_v38 = vmax.f32 %v226_v29, 0.0  ;;  %v205_v39 = vmul.f32 %v530_v0, %v182_v24  ;;  %v206_v40 = vmul.f32 %v530_v0, %v183_v25 }
  0x16   : > { %v441_v43 = vpack.c.bf16 %v239_v31, %v238_v28  ;;  %v446_v44 = vpack.c.bf16 %v241_v33, %v240_v32  ;;  %v243_v45 = vmax.f32 %v227_v34, 0.0  ;;  %v207_v46 = vmul.f32 %v530_v0, %v184_v30 }
  0x17   : > { %437 = vst [vmem:[%s572_s26] sm:$0xff] %v436_v37   ;;  %v228_v47 = vadd.f32 %v540_v1, %v205_v39  ;;  %v229_v48 = vadd.f32 %v540_v1, %v206_v40  ;;  %v208_v49 = vmul.f32 %v530_v0, %v185_v35  ;;  %v209_v50 = vmul.f32 %v530_v0, %v186_v36 }
  0x18   : > { %473 = vst [vmem:[%s572_s26 + $0x8] sm:$0xff] %v441_v43   ;;  %474 = vst [vmem:[%s572_s26 + $0x10] sm:$0xff] %v446_v44   ;;  %v451_v52 = vpack.c.bf16 %v243_v45, %v242_v38  ;;  %v230_v53 = vadd.f32 %v540_v1, %v207_v46  ;;  %v210_v54 = vmul.f32 %v530_v0, %v187_v41 }
  0x19   : > { %v211_v55 = vmul.f32 %v530_v0, %v188_v42  ;;  %v244_v56 = vmax.f32 %v228_v47, 0.0  ;;  %v245_v57 = vmax.f32 %v229_v48, 0.0  ;;  %v231_v58 = vadd.f32 %v540_v1, %v208_v49 }
  0x1a   : > { %v232_v59 = vadd.f32 %v540_v1, %v209_v50  ;;  %475 = vst [vmem:[%s572_s26 + $0x18] sm:$0xff] %v451_v52   ;;  %v246_v60 = vmax.f32 %v230_v53, 0.0  ;;  %v233_v61 = vadd.f32 %v540_v1, %v210_v54  ;;  %v212_v62 = vmul.f32 %v530_v0, %v189_v51 }
  0x1b   : > { %v234_v63 = vadd.f32 %v540_v1, %v211_v55  ;;  %v456_v2 = vpack.c.bf16 %v245_v57, %v244_v56  ;;  %v247_v3 = vmax.f32 %v231_v58, 0.0 }
  0x1c   : > { %v248_v4 = vmax.f32 %v232_v59, 0.0  ;;  %v249_v5 = vmax.f32 %v233_v61, 0.0  ;;  %v235_v6 = vadd.f32 %v540_v1, %v212_v62 }
  0x1d   : > { %v250_v7 = vmax.f32 %v234_v63, 0.0  ;;  %476 = vst [vmem:[%s572_s26 + $0x20] sm:$0xff] %v456_v2   ;;  %v461_v8 = vpack.c.bf16 %v247_v3, %v246_v60 }
  0x1e   : > { %v466_v9 = vpack.c.bf16 %v249_v5, %v248_v4  ;;  %v251_v10 = vmax.f32 %v235_v6, 0.0 }
  0x1f   : > { %477 = vst [vmem:[%s572_s26 + $0x28] sm:$0xff] %v461_v8  }
  0x20   : > { %478 = vst [vmem:[%s572_s26 + $0x30] sm:$0xff] %v466_v9   ;;  %v471_v11 = vpack.c.bf16 %v251_v10, %v250_v7 }
  0x22   : > { %479 = vst [vmem:[%s572_s26 + $0x38] sm:$0xff] %v471_v11  }
  0x23 PF: > { %s13_s12 = sadd.s32 1, %s494_s12  }
  0x24   : > { %p10_p4 = scmp.ge.s32.totalorder %s13_s12, 6  }
  0x26   :  { %12 = sbr.rel (!%p10_p4) target bundleno = 1 (0x1), region = 62 }

// kernel: up_forward.6
= control target key start
LH: loop header
LB: loop body
LE: loop exit
PB: predicated region body
PF: predicated region fallthrough
CT: control target
= control target key end

     0   :  { %s859_s15 = smov 0   ;;  %s1044_s0 = inlined_call_operand.vmem [shape: bf16[512,128], index: 0, kind: input, shape index: {}]   ;;  %s1045_s1 = inlined_call_operand.vmem [shape: bf16[128,128], index: 1, kind: input, shape index: {}]   ;;  %s1046_s2 = inlined_call_operand.vmem [shape: f32[1,128], index: 2, kind: input, shape index: {}]   ;;  %s1047_s3 = inlined_call_operand.vmem [shape: f32[512,128], index: 3, kind: output, shape index: {0}]   ;;  %s1048_s4 = inlined_call_operand.vmem [shape: f32[4,2,128], index: 4, kind: output, shape index: {1}]  }
   0x1 LB: > { %s865_s16 = sadd.s32 4294967295, %s832_s15   ;;  %p712_p0 = scmp.ge.s32.totalorder %s832_s15, 1  ;;  %s832_s15 = sphi %s859_s15, %s15_s15  }
   0x2   : > { %p166_p1 = scmp.lt.s32.totalorder %s832_s15, 5 }
   0x4   : > { %p167_p2 = pnand %p712_p0, %p166_p1 }
   0x5   : > { %s713_s19 = sshll.u32 (!%p167_p2), %s865_s16, 4  ;;  %s735_s12 = sshll.u32 (!%p167_p2), %s865_s16, 7 }
   0x6   : > { %170 = sbr.rel (%p167_p2) target bundleno = 292 (0x124), region = 32  ;;  %p197_p3 = scmp.lt.s32.totalorder (!%p167_p2), %s713_s19, 63 }
   0x7   : > { %p208_p4 = scmp.lt.s32.totalorder (!%p167_p2), %s865_s16, 3 }
   0xb   : > { %v810_v0 = vld [vmem:[%s1045_s1 + $0x38] sm:$0xff]   ;;  %v811_v1 = vld [vmem:[%s1045_s1 + $0x30] sm:$0xff]   ;;  %s1050_s19 = smov (!%p197_p3, %s713_s19), 63  ;;  %v812_v2 = vld [vmem:[%s1045_s1 + $0x28] sm:$0xff]   ;;  %v462_v16 = vlaneseq  ;;  %v921_v21 = vstv %s735_s12  ;;  %s1052_s16 = smov (!%p208_p4, %s865_s16), 3 }
   0xc   : > { %754 = vmatprep.subr.bf16.mxu0 %v810_v0  ;;  %786 = vmatprep.subr.bf16.mxu1 %v810_v0  ;;  %s714_s24 = sshll.u32 %s1050_s19, 2  ;;  %v813_v3 = vld [vmem:[%s1045_s1 + $0x20] sm:$0xff]   ;;  %v814_v5 = vld [vmem:[%s1045_s1 + $0x18] sm:$0xff]   ;;  %v815_v7 = vld [vmem:[%s1045_s1 + $0x10] sm:$0xff]   ;;  %s716_s13 = sshll.u32 %s1050_s19, 3 }
   0xd   : > { %755 = vmatpush3.bf16.msra.mxu0 %v810_v0  ;;  %794 = vmatpush3.bf16.msra.mxu1 %v810_v0  ;;  %s885_s27 = scalar_lea.vmem %s1044_s0, %s714_s24  ;;  %v816_v8 = vld [vmem:[%s1045_s1 + $0x8] sm:$0xff]   ;;  %v817_v9 = vld [vmem:[%s1045_s1] sm:$0xff]   ;;  %v910_v17 = vshrl.u32 %v462_v16, 7  ;;  %s927_s21 = scalar_lea.vmem %s1047_s3, %s716_s13 }
   0xe   : > { %756 = vmatprep.subr.bf16.mxu0 %v811_v1  ;;  %787 = vmatprep.subr.bf16.mxu1 %v811_v1  ;;  %v818_v4 = vld [vmem:[%s885_s27] sm:$0xff]   ;;  %v819_v10 = vld [vmem:[%s885_s27 + $0x8] sm:$0xff]   ;;  %v820_v12 = vld [vmem:[%s885_s27 + $0x10] sm:$0xff]   ;;  %s717_s19 = sshll.u32 %s1052_s16, 1 }
   0xf   : > { %770 = vmatprep.mubr.bf16.mxu0 %v818_v4  ;;  %v822_v6 = vld [vmem:[%s885_s27 + $0x20] sm:$0xff]   ;;  %v823_v11 = vld [vmem:[%s885_s27 + $0x28] sm:$0xff]   ;;  %v824_v13 = vld [vmem:[%s885_s27 + $0x30] sm:$0xff]   ;;  %v465_v19 = vadd.s32 16, %v910_v17  ;;  %v464_v20 = vadd.s32 8, %v910_v17  ;;  %v466_v22 = vadd.s32 24, %v910_v17  ;;  %v480_v24 = vadd.s32 %v921_v21, %v910_v17  ;;  %s211_s24 = scalar_lea.vmem %s1048_s4, %s717_s19 }
  0x10   : > { %778 = vmatprep.mubr.bf16.mxu1 %v822_v6  ;;  %v821_v14 = vld [vmem:[%s885_s27 + $0x18] sm:$0xff]   ;;  %v917_v18 = vld [vmem:[%s1046_s2] ss:$0 sm:$0xff]  ;;  %v469_v25 = vadd.s32 48, %v910_v17  ;;  %v467_v27 = vadd.s32 32, %v910_v17  ;;  %v470_v40 = vadd.s32 56, %v910_v17 }
  0x11   : > { %757 = vmatpush3.bf16.msra.mxu0 %v811_v1  ;;  %795 = vmatpush3.bf16.msra.mxu1 %v811_v1  ;;  %v825_v15 = vld [vmem:[%s885_s27 + $0x38] sm:$0xff]   ;;  %v482_v30 = vadd.s32 %v921_v21, %v465_v19  ;;  %v481_v32 = vadd.s32 %v921_v21, %v464_v20  ;;  %v483_v35 = vadd.s32 %v921_v21, %v466_v22  ;;  %vm496_vm0 = vcmp.lt.s32.totalorder %v480_v24, 392 }
  0x12   : > { %758 = vmatprep.subr.bf16.mxu0 %v812_v2  ;;  %788 = vmatprep.subr.bf16.mxu1 %v812_v2  ;;  %v948_v38 = vadd.s32 %v921_v21, %v469_v25  ;;  %v484_v39 = vadd.s32 %v921_v21, %v467_v27  ;;  %v468_v45 = vadd.s32 40, %v910_v17  ;;  %v471_v51 = vadd.s32 64, %v910_v17 }
  0x13   : > { %vm498_vm1 = vcmp.lt.s32.totalorder %v482_v30, 392  ;;  %vm497_vm2 = vcmp.lt.s32.totalorder %v481_v32, 392  ;;  %vm499_vm3 = vcmp.lt.s32.totalorder %v483_v35, 392  ;;  %v487_v52 = vadd.s32 %v921_v21, %v470_v40 }
  0x14   : > { %vm502_vm4 = vcmp.lt.s32.totalorder %v948_v38, 392  ;;  %vm500_vm5 = vcmp.lt.s32.totalorder %v484_v39, 392  ;;  %v485_v62 = vadd.s32 %v921_v21, %v468_v45  ;;  %v474_v22 = vadd.s32 88, %v910_v17 }
  0x15   : > { %759 = vmatpush3.bf16.msra.mxu0 %v812_v2  ;;  %796 = vmatpush3.bf16.msra.mxu1 %v812_v2  ;;  %v472_v2 = vadd.s32 72, %v910_v17  ;;  %vm503_vm7 = vcmp.lt.s32.totalorder %v487_v52, 392  ;;  %v477_v45 = vadd.s32 112, %v910_v17  ;;  %v478_v52 = vadd.s32 120, %v910_v17 }
  0x16   : > { %760 = vmatprep.subr.bf16.mxu0 %v813_v3  ;;  %789 = vmatprep.subr.bf16.mxu1 %v813_v3  ;;  %vm501_vm6 = vcmp.lt.s32.totalorder %v485_v62, 392  ;;  %v491_v39 = vadd.s32 %v921_v21, %v474_v22 }
  0x17   : > { %v489_v24 = vadd.s32 %v921_v21, %v472_v2 }
  0x18   : > { %vm507_vm11 = vcmp.lt.s32.totalorder %v491_v39, 392 }
  0x19   : > { %761 = vmatpush3.bf16.msra.mxu0 %v813_v3  ;;  %797 = vmatpush3.bf16.msra.mxu1 %v813_v3  ;;  %vm505_vm9 = vcmp.lt.s32.totalorder %v489_v24, 392 }
  0x1a   : > { %762 = vmatprep.subr.bf16.mxu0 %v814_v5  ;;  %790 = vmatprep.subr.bf16.mxu1 %v814_v5 }
  0x1d   : > { %763 = vmatpush3.bf16.msra.mxu0 %v814_v5  ;;  %798 = vmatpush3.bf16.msra.mxu1 %v814_v5 }
  0x1e   : > { %764 = vmatprep.subr.bf16.mxu0 %v815_v7  ;;  %791 = vmatprep.subr.bf16.mxu1 %v815_v7 }
  0x21   : > { %765 = vmatpush3.bf16.msra.mxu0 %v815_v7  ;;  %799 = vmatpush3.bf16.msra.mxu1 %v815_v7  ;;  %v473_v7 = vadd.s32 80, %v910_v17 }
  0x22   : > { %766 = vmatprep.subr.bf16.mxu0 %v816_v8  ;;  %792 = vmatprep.subr.bf16.mxu1 %v816_v8 }
  0x25   : > { %767 = vmatpush3.bf16.msra.mxu0 %v816_v8  ;;  %800 = vmatpush3.bf16.msra.mxu1 %v816_v8 }
  0x26   : > { %768 = vmatprep.subr.bf16.mxu0 %v817_v9  ;;  %793 = vmatprep.subr.bf16.mxu1 %v817_v9 }
  0x29   : > { %769 = vmatpush3.bf16.msra.mxu0 %v817_v9  ;;  %801 = vmatpush3.bf16.msra.mxu1 %v817_v9 }
  0x2c   : > { %771 = vmatmul.mubr.bf16.vlgmr.msra.gmra.mxu0 %v819_v10  ;;  %779 = vmatmul.mubr.bf16.vlgmr.msra.gmra.mxu1 %v823_v11  ;;  %v488_v11 = vadd.s32 %v921_v21, %v471_v51 }
  0x2d   : > { %774 = vmatprep.mubr.bf16.mxu0 %v820_v12  ;;  %782 = vmatprep.mubr.bf16.mxu1 %v824_v13 }
  0x2e   : > { %vm504_vm8 = vcmp.lt.s32.totalorder %v488_v11, 392 }
  0x34   : > { %775 = vmatmul.mubr.bf16.gmra.mxu0 %v821_v14  ;;  %783 = vmatmul.mubr.bf16.gmra.mxu1 %v825_v15 }
  0xec   : > { %v772_v23 = vpop.f32.mrf.mxu0  ;;  %v780_v26 = vpop.f32.mrf.mxu1 }
  0xed   : > { %v391_v28 = vadd.f32 %v772_v23, %v917_v18  ;;  %v935_v29 = vadd.f32 %v780_v26, %v917_v18 }
  0xee   : > { %v382_v31 = vpop.f32.mrf.mxu0  ;;  %v414_v33 = vpop.f32.mrf.mxu1 }
  0xef   : > { %447 = vst [vmem:[%s927_s21 + $0x10] sm:$0xff] %v391_v28  ;;  %v383_v34 = vadd.f32 %v917_v18, %v382_v31  ;;  %455 = vst [vmem:[%s927_s21 + $0x50] sm:$0xff] %v935_v29  ;;  %v945_v36 = vadd.f32 %v917_v18, %v414_v33  ;;  %v546_v54 = vsel %vm498_vm1, %v391_v28, 0.0  ;;  %v490_v31 = vadd.s32 %v921_v21, %v473_v7 }
  0xf0   : > { %v773_v37 = vpop.f32.mrf.mxu0  ;;  %v781_v41 = vpop.f32.mrf.mxu1  ;;  %v583_v4 = vmul.f32 %v546_v54, %v391_v28 }
  0xf1   : > { %445 = vst [vmem:[%s927_s21] sm:$0xff] %v383_v34  ;;  %v394_v42 = vadd.f32 %v773_v37, %v917_v18  ;;  %453 = vst [vmem:[%s927_s21 + $0x40] sm:$0xff] %v945_v36  ;;  %v957_v43 = vadd.f32 %v781_v41, %v917_v18  ;;  %v544_v47 = vsel %vm496_vm0, %v383_v34, 0.0  ;;  %v475_v37 = vadd.s32 96, %v910_v17 }
  0xf2   : > { %v385_v44 = vpop.f32.mrf.mxu0  ;;  %v417_v46 = vpop.f32.mrf.mxu1  ;;  %v581_v58 = vmul.f32 %v544_v47, %v383_v34  ;;  %vm506_vm10 = vcmp.lt.s32.totalorder %v490_v31, 392  ;;  %vm618_vm0 = vcmask 1040384  }
  0xf3   : > { %448 = vst [vmem:[%s927_s21 + $0x18] sm:$0xff] %v394_v42  ;;  %v386_v48 = vadd.f32 %v917_v18, %v385_v44  ;;  %456 = vst [vmem:[%s927_s21 + $0x58] sm:$0xff] %v957_v43  ;;  %v965_v49 = vadd.f32 %v917_v18, %v417_v46  ;;  %v547_v0 = vsel %vm499_vm3, %v394_v42, 0.0  ;;  %v552_v44 = vsel %vm504_vm8, %v945_v36, 0.0 }
  0xf4   : > { %v776_v50 = vpop.f32.mrf.mxu0  ;;  %v784_v53 = vpop.f32.mrf.mxu1  ;;  %v584_v14 = vmul.f32 %v547_v0, %v394_v42  ;;  %v476_v42 = vadd.s32 104, %v910_v17 }
  0xf5   : > { %446 = vst [vmem:[%s927_s21 + $0x8] sm:$0xff] %v386_v48  ;;  %v545_v55 = vsel %vm497_vm2, %v386_v48, 0.0  ;;  %v407_v56 = vadd.f32 %v776_v50, %v917_v18  ;;  %454 = vst [vmem:[%s927_s21 + $0x48] sm:$0xff] %v965_v49  ;;  %v977_v57 = vadd.f32 %v784_v53, %v917_v18  ;;  %v492_v50 = vadd.s32 %v921_v21, %v475_v37 }
  0xf6   : > { %v560_v59 = vadd.f32 %v545_v55, %v544_v47  ;;  %v582_v60 = vmul.f32 %v545_v55, %v386_v48  ;;  %v398_v61 = vpop.f32.mrf.mxu0  ;;  %v430_v63 = vpop.f32.mrf.mxu1  ;;  %v553_v51 = vsel %vm505_vm9, %v965_v49, 0.0  ;;  %v589_v53 = vmul.f32 %v552_v44, %v945_v36 }
  0xf7   : > { %451 = vst [vmem:[%s927_s21 + $0x30] sm:$0xff] %v407_v56  ;;  %v399_v1 = vadd.f32 %v917_v18, %v398_v61  ;;  %459 = vst [vmem:[%s927_s21 + $0x70] sm:$0xff] %v977_v57  ;;  %v987_v3 = vadd.f32 %v917_v18, %v430_v63  ;;  %v550_v30 = vsel %vm502_vm4, %v407_v56, 0.0  ;;  %v590_v61 = vmul.f32 %v553_v51, %v965_v49 }
  0xf8   : > { %v561_v5 = vadd.f32 %v560_v59, %v546_v54  ;;  %v597_v6 = vadd.f32 %v582_v60, %v581_v58  ;;  %v777_v8 = vpop.f32.mrf.mxu0  ;;  %v785_v9 = vpop.f32.mrf.mxu1  ;;  %v587_v40 = vmul.f32 %v550_v30, %v407_v56  ;;  %v493_v56 = vadd.s32 %v921_v21, %v476_v42 }
  0xf9   : > { %449 = vst [vmem:[%s927_s21 + $0x20] sm:$0xff] %v399_v1  ;;  %v548_v10 = vsel %vm500_vm5, %v399_v1, 0.0  ;;  %v410_v12 = vadd.f32 %v777_v8, %v917_v18  ;;  %457 = vst [vmem:[%s927_s21 + $0x60] sm:$0xff] %v987_v3  ;;  %v997_v13 = vadd.f32 %v785_v9, %v917_v18  ;;  %v554_v58 = vsel %vm506_vm10, %v935_v29, 0.0 }
  0xfa   : > { %v598_v15 = vadd.f32 %v597_v6, %v583_v4  ;;  %v562_v16 = vadd.f32 %v561_v5, %v547_v0  ;;  %v401_v19 = vpop.f32.mrf.mxu0  ;;  %v433_v20 = vpop.f32.mrf.mxu1  ;;  %v585_v27 = vmul.f32 %v548_v10, %v399_v1  ;;  %v494_v59 = vadd.s32 %v921_v21, %v477_v45 }
  0xfb   : > { %452 = vst [vmem:[%s927_s21 + $0x38] sm:$0xff] %v410_v12  ;;  %v402_v23 = vadd.f32 %v917_v18, %v401_v19  ;;  %460 = vst [vmem:[%s927_s21 + $0x78] sm:$0xff] %v997_v13  ;;  %v434_v25 = vadd.f32 %v917_v18, %v433_v20  ;;  %v551_v18 = vsel %vm503_vm7, %v410_v12, 0.0  ;;  %vm508_vm12 = vcmp.lt.s32.totalorder %v492_v50, 392 }
  0xfc   : > { %v563_v26 = vadd.f32 %v562_v16, %v548_v10  ;;  %v599_v28 = vadd.f32 %v598_v15, %v584_v14  ;;  %v588_v46 = vmul.f32 %v551_v18, %v410_v12  ;;  %v555_v63 = vsel %vm507_vm11, %v957_v43, 0.0 }
  0xfd   : > { %450 = vst [vmem:[%s927_s21 + $0x28] sm:$0xff] %v402_v23  ;;  %v549_v32 = vsel %vm501_vm6, %v402_v23, 0.0  ;;  %458 = vst [vmem:[%s927_s21 + $0x68] sm:$0xff] %v434_v25  ;;  %v495_v0 = vadd.s32 %v921_v21, %v478_v52  ;;  %v591_v17 = vmul.f32 %v554_v58, %v935_v29  ;;  %vm509_vm13 = vcmp.lt.s32.totalorder %v493_v56, 392 }
  0xfe   : > { %v600_v33 = vadd.f32 %v599_v28, %v585_v27  ;;  %v564_v34 = vadd.f32 %v563_v26, %v549_v32  ;;  %v586_v35 = vmul.f32 %v549_v32, %v402_v23  ;;  %v556_v2 = vsel %vm508_vm12, %v987_v3, 0.0 }
  0xff   : > { %v592_v4 = vmul.f32 %v555_v63, %v957_v43  ;;  %vm510_vm14 = vcmp.lt.s32.totalorder %v494_v59, 392  ;;  %v557_v7 = vsel %vm509_vm13, %v434_v25, 0.0  ;;  %v593_v8 = vmul.f32 %v556_v2, %v987_v3 }
 0x100   : > { %v565_v41 = vadd.f32 %v564_v34, %v550_v30  ;;  %v601_v38 = vadd.f32 %v600_v33, %v586_v35  ;;  %vm511_vm15 = vcmp.lt.s32.totalorder %v495_v0, 392  ;;  %v558_v21 = vsel %vm510_vm14, %v977_v57, 0.0 }
 0x101   : > { %v594_v11 = vmul.f32 %v557_v7, %v434_v25  ;;  %v559_v12 = vsel %vm511_vm15, %v997_v13, 0.0  ;;  %v595_v43 = vmul.f32 %v558_v21, %v977_v57 }
 0x102   : > { %v602_v47 = vadd.f32 %v601_v38, %v587_v40  ;;  %v566_v48 = vadd.f32 %v565_v41, %v551_v18  ;;  %v596_v16 = vmul.f32 %v559_v12, %v997_v13 }
 0x104   : > { %v567_v54 = vadd.f32 %v566_v48, %v552_v44  ;;  %v603_v55 = vadd.f32 %v602_v47, %v588_v46 }
 0x106   : > { %v568_v60 = vadd.f32 %v567_v54, %v553_v51  ;;  %v604_v62 = vadd.f32 %v603_v55, %v589_v53 }
 0x108   : > { %v569_v36 = vadd.f32 %v568_v60, %v554_v58  ;;  %v605_v1 = vadd.f32 %v604_v62, %v590_v61 }
 0x10a   : > { %v606_v5 = vadd.f32 %v605_v1, %v591_v17  ;;  %v570_v6 = vadd.f32 %v569_v36, %v555_v63 }
 0x10c   : > { %v571_v49 = vadd.f32 %v570_v6, %v556_v2  ;;  %v607_v9 = vadd.f32 %v606_v5, %v592_v4 }
 0x10e   : > { %v608_v29 = vadd.f32 %v607_v9, %v593_v8  ;;  %v572_v10 = vadd.f32 %v571_v49, %v557_v7 }
 0x110   : > { %v573_v14 = vadd.f32 %v572_v10, %v558_v21  ;;  %v609_v15 = vadd.f32 %v608_v29, %v594_v11 }
 0x112   : > { %v574_v19 = vadd.f32 %v573_v14, %v559_v12  ;;  %v610_v20 = vadd.f32 %v609_v15, %v595_v43 }
 0x114   : > { %v575_v3 = vrot.slane %v574_v19, 4  ;;  %v611_v22 = vadd.f32 %v610_v20, %v596_v16 }
 0x116   : > { %v576_v23 = vadd.f32 %v575_v3, %v574_v19  ;;  %v612_v24 = vrot.slane %v611_v22, 4 }
 0x118   : > { %v577_v26 = vrot.slane %v576_v23, 2  ;;  %v613_v27 = vadd.f32 %v612_v24, %v611_v22 }
 0x11a   : > { %v578_v28 = vadd.f32 %v577_v26, %v576_v23  ;;  %v614_v25 = vrot.slane %v613_v27, 2 }
 0x11c   : > { %v579_v30 = vrot.slane %v578_v28, 1  ;;  %v615_v31 = vadd.f32 %v614_v25, %v613_v27 }
 0x11e   : > { %v616_v57 = vrot.slane %v615_v31, 1  ;;  %v580_v13 = vadd.f32 %v579_v30, %v578_v28 }
 0x120   : > { %v617_v32 = vadd.f32 %v616_v57, %v615_v31 }
 0x122   : > { %v619_v33 = vsel %vm618_vm0, %v580_v13, %v617_v32 }
 0x123   : > { %620 = vst [vmem:[%s211_s24] sm:$0x3] %v619_v33 }
 0x124 PF: > { %s15_s15 = sadd.s32 1, %s832_s15  }
 0x125   : > { %p12_p5 = scmp.ge.s32.totalorder %s15_s15, 6  }
 0x127   :  { %14 = sbr.rel (!%p12_p5) target bundleno = 1 (0x1), region = 74 }

// kernel: up_forward.9
= control target key start
LH: loop header
LB: loop body
LE: loop exit
PB: predicated region body
PF: predicated region fallthrough
CT: control target
= control target key end

     0   :  { %s373_s12 = smov 0   ;;  %s468_s0 = inlined_call_operand.vmem [shape: f32[384,128], index: 0, kind: input, shape index: {}]   ;;  %s469_s1 = inlined_call_operand.vmem [shape: f32[1,128], index: 1, kind: input, shape index: {}]   ;;  %s470_s2 = inlined_call_operand.vmem [shape: f32[1,128], index: 2, kind: input, shape index: {}]   ;;  %s471_s3 = inlined_call_operand.vmem [shape: f32[384,128], index: 3, kind: output, shape index: {}]  }
   0x1 LB: > { %s324_s13 = sadd.s32 4294967295, %s351_s12   ;;  %p328_p0 = scmp.ge.s32.totalorder %s351_s12, 1  ;;  %s351_s12 = sphi %s373_s12, %s13_s12  }
   0x2   : > { %p138_p1 = scmp.lt.s32.totalorder %s351_s12, 4 }
   0x4   : > { %p139_p2 = pnand %p328_p0, %p138_p1 }
   0x5   : > { %s329_s14 = sshll.u32 (!%p139_p2), %s324_s13, 4 }
   0x6   : > { %142 = sbr.rel (%p139_p2) target bundleno = 32 (0x20), region = 32  ;;  %p163_p3 = scmp.lt.s32.totalorder (!%p139_p2), %s329_s14, 47 }
   0xb   : > { %s473_s14 = smov (!%p163_p3, %s329_s14), 47  ;;  %v384_v0 = vld [vmem:[%s469_s1] ss:$0 sm:$0xff] }
   0xc   : > { %s330_s15 = sshll.u32 %s473_s14, 3  ;;  %v394_v1 = vld [vmem:[%s470_s2] ss:$0 sm:$0xff] }
   0xd   : > { %s389_s20 = scalar_lea.vmem %s468_s0, %s330_s15  ;;  %s417_s25 = scalar_lea.vmem %s471_s3, %s330_s15 }
   0xe   : > { %v174_v2 = vld [vmem:[%s389_s20] sm:$0xff]  ;;  %v175_v3 = vld [vmem:[%s389_s20 + $0x8] sm:$0xff]  ;;  %v176_v4 = vld [vmem:[%s389_s20 + $0x10] sm:$0xff] }
   0xf   : > { %v197_v5 = vmul.f32 %v384_v0, %v174_v2  ;;  %v198_v6 = vmul.f32 %v384_v0, %v175_v3  ;;  %v199_v7 = vmul.f32 %v384_v0, %v176_v4  ;;  %v177_v8 = vld [vmem:[%s389_s20 + $0x18] sm:$0xff]  ;;  %v178_v9 = vld [vmem:[%s389_s20 + $0x20] sm:$0xff]  ;;  %v179_v10 = vld [vmem:[%s389_s20 + $0x28] sm:$0xff] }
  0x10   : > { %v200_v11 = vmul.f32 %v384_v0, %v177_v8  ;;  %v201_v12 = vmul.f32 %v384_v0, %v178_v9  ;;  %v202_v13 = vmul.f32 %v384_v0, %v179_v10  ;;  %v180_v14 = vld [vmem:[%s389_s20 + $0x30] sm:$0xff]  ;;  %v181_v15 = vld [vmem:[%s389_s20 + $0x38] sm:$0xff]  ;;  %v182_v24 = vld [vmem:[%s389_s20 + $0x40] sm:$0xff] }
  0x11   : > { %v220_v16 = vadd.f32 %v394_v1, %v197_v5  ;;  %v221_v17 = vadd.f32 %v394_v1, %v198_v6  ;;  %v222_v18 = vadd.f32 %v394_v1, %v199_v7  ;;  %v203_v19 = vmul.f32 %v384_v0, %v180_v14  ;;  %v183_v25 = vld [vmem:[%s389_s20 + $0x48] sm:$0xff]  ;;  %v184_v26 = vld [vmem:[%s389_s20 + $0x50] sm:$0xff]  ;;  %v185_v31 = vld [vmem:[%s389_s20 + $0x58] sm:$0xff] }
  0x12   : > { %v223_v20 = vadd.f32 %v394_v1, %v200_v11  ;;  %v224_v21 = vadd.f32 %v394_v1, %v201_v12  ;;  %v225_v22 = vadd.f32 %v394_v1, %v202_v13  ;;  %v204_v23 = vmul.f32 %v384_v0, %v181_v15  ;;  %v186_v32 = vld [vmem:[%s389_s20 + $0x60] sm:$0xff]  ;;  %v187_v33 = vld [vmem:[%s389_s20 + $0x68] sm:$0xff]  ;;  %v188_v38 = vld [vmem:[%s389_s20 + $0x70] sm:$0xff] }
  0x13   : > { %v236_v27 = vmax.f32 %v220_v16, 0.0  ;;  %v237_v28 = vmax.f32 %v221_v17, 0.0  ;;  %v238_v29 = vmax.f32 %v222_v18, 0.0  ;;  %v226_v30 = vadd.f32 %v394_v1, %v203_v19  ;;  %v189_v43 = vld [vmem:[%s389_s20 + $0x78] sm:$0xff] }
  0x14   : > { %v239_v34 = vmax.f32 %v223_v20, 0.0  ;;  %v240_v35 = vmax.f32 %v224_v21, 0.0  ;;  %v241_v36 = vmax.f32 %v225_v22, 0.0  ;;  %v227_v37 = vadd.f32 %v394_v1, %v204_v23 }
  0x15   : > { %252 = vst [vmem:[%s417_s25] sm:$0xff] %v236_v27  ;;  %253 = vst [vmem:[%s417_s25 + $0x8] sm:$0xff] %v237_v28  ;;  %v242_v39 = vmax.f32 %v226_v30, 0.0  ;;  %v205_v40 = vmul.f32 %v384_v0, %v182_v24  ;;  %v206_v41 = vmul.f32 %v384_v0, %v183_v25  ;;  %v207_v42 = vmul.f32 %v384_v0, %v184_v26 }
  0x16   : > { %254 = vst [vmem:[%s417_s25 + $0x10] sm:$0xff] %v238_v29  ;;  %255 = vst [vmem:[%s417_s25 + $0x18] sm:$0xff] %v239_v34  ;;  %v243_v44 = vmax.f32 %v227_v37, 0.0  ;;  %v208_v45 = vmul.f32 %v384_v0, %v185_v31  ;;  %v209_v46 = vmul.f32 %v384_v0, %v186_v32  ;;  %v210_v47 = vmul.f32 %v384_v0, %v187_v33 }
  0x17   : > { %256 = vst [vmem:[%s417_s25 + $0x20] sm:$0xff] %v240_v35  ;;  %257 = vst [vmem:[%s417_s25 + $0x28] sm:$0xff] %v241_v36  ;;  %v228_v48 = vadd.f32 %v394_v1, %v205_v40  ;;  %v229_v49 = vadd.f32 %v394_v1, %v206_v41  ;;  %v230_v50 = vadd.f32 %v394_v1, %v207_v42 }
  0x18   : > { %258 = vst [vmem:[%s417_s25 + $0x30] sm:$0xff] %v242_v39  ;;  %v211_v51 = vmul.f32 %v384_v0, %v188_v38  ;;  %259 = vst [vmem:[%s417_s25 + $0x38] sm:$0xff] %v243_v44  ;;  %v231_v52 = vadd.f32 %v394_v1, %v208_v45  ;;  %v232_v53 = vadd.f32 %v394_v1, %v209_v46 }
  0x19   : > { %v233_v54 = vadd.f32 %v394_v1, %v210_v47  ;;  %v212_v55 = vmul.f32 %v384_v0, %v189_v43  ;;  %v244_v56 = vmax.f32 %v228_v48, 0.0  ;;  %v245_v57 = vmax.f32 %v229_v49, 0.0 }
  0x1a   : > { %v246_v58 = vmax.f32 %v230_v50, 0.0  ;;  %v234_v59 = vadd.f32 %v394_v1, %v211_v51  ;;  %v247_v60 = vmax.f32 %v231_v52, 0.0  ;;  %v248_v61 = vmax.f32 %v232_v53, 0.0 }
  0x1b   : > { %v249_v62 = vmax.f32 %v233_v54, 0.0  ;;  %v235_v63 = vadd.f32 %v394_v1, %v212_v55  ;;  %260 = vst [vmem:[%s417_s25 + $0x40] sm:$0xff] %v244_v56  ;;  %261 = vst [vmem:[%s417_s25 + $0x48] sm:$0xff] %v245_v57 }
  0x1c   : > { %262 = vst [vmem:[%s417_s25 + $0x50] sm:$0xff] %v246_v58  ;;  %v250_v2 = vmax.f32 %v234_v59, 0.0  ;;  %263 = vst [vmem:[%s417_s25 + $0x58] sm:$0xff] %v247_v60 }
  0x1d   : > { %264 = vst [vmem:[%s417_s25 + $0x60] sm:$0xff] %v248_v61  ;;  %265 = vst [vmem:[%s417_s25 + $0x68] sm:$0xff] %v249_v62  ;;  %v251_v0 = vmax.f32 %v235_v63, 0.0 }
  0x1e   : > { %266 = vst [vmem:[%s417_s25 + $0x70] sm:$0xff] %v250_v2 }
  0x1f   : > { %267 = vst [vmem:[%s417_s25 + $0x78] sm:$0xff] %v251_v0 }
  0x20 PF: > { %s13_s12 = sadd.s32 1, %s351_s12  }
  0x21   : > { %p10_p4 = scmp.ge.s32.totalorder %s13_s12, 5  }
  0x23   :  { %12 = sbr.rel (!%p10_p4) target bundleno = 1 (0x1), region = 62 }

// kernel: up_forward.8
= control target key start
LH: loop header
LB: loop body
LE: loop exit
PB: predicated region body
PF: predicated region fallthrough
CT: control target
= control target key end

     0   :  { %s859_s15 = smov 0   ;;  %s1044_s0 = inlined_call_operand.vmem [shape: bf16[384,128], index: 0, kind: input, shape index: {}]   ;;  %s1045_s1 = inlined_call_operand.vmem [shape: bf16[128,128], index: 1, kind: input, shape index: {}]   ;;  %s1046_s2 = inlined_call_operand.vmem [shape: f32[1,128], index: 2, kind: input, shape index: {}]   ;;  %s1047_s3 = inlined_call_operand.vmem [shape: f32[384,128], index: 3, kind: output, shape index: {0}]   ;;  %s1048_s4 = inlined_call_operand.vmem [shape: f32[3,2,128], index: 4, kind: output, shape index: {1}]  }
   0x1 LB: > { %s865_s16 = sadd.s32 4294967295, %s832_s15   ;;  %p712_p0 = scmp.ge.s32.totalorder %s832_s15, 1  ;;  %s832_s15 = sphi %s859_s15, %s15_s15  }
   0x2   : > { %p166_p1 = scmp.lt.s32.totalorder %s832_s15, 4 }
   0x4   : > { %p167_p2 = pnand %p712_p0, %p166_p1 }
   0x5   : > { %s713_s19 = sshll.u32 (!%p167_p2), %s865_s16, 4  ;;  %s735_s12 = sshll.u32 (!%p167_p2), %s865_s16, 7 }
   0x6   : > { %170 = sbr.rel (%p167_p2) target bundleno = 292 (0x124), region = 32  ;;  %p197_p3 = scmp.lt.s32.totalorder (!%p167_p2), %s713_s19, 47 }
   0x7   : > { %p208_p4 = scmp.lt.s32.totalorder (!%p167_p2), %s865_s16, 2 }
   0xb   : > { %v810_v0 = vld [vmem:[%s1045_s1 + $0x38] sm:$0xff]   ;;  %v811_v1 = vld [vmem:[%s1045_s1 + $0x30] sm:$0xff]   ;;  %s1050_s19 = smov (!%p197_p3, %s713_s19), 47  ;;  %v812_v2 = vld [vmem:[%s1045_s1 + $0x28] sm:$0xff]   ;;  %v462_v16 = vlaneseq  ;;  %v921_v21 = vstv %s735_s12  ;;  %s1052_s16 = smov (!%p208_p4, %s865_s16), 2 }
   0xc   : > { %754 = vmatprep.subr.bf16.mxu0 %v810_v0  ;;  %786 = vmatprep.subr.bf16.mxu1 %v810_v0  ;;  %s714_s24 = sshll.u32 %s1050_s19, 2  ;;  %v813_v3 = vld [vmem:[%s1045_s1 + $0x20] sm:$0xff]   ;;  %v814_v5 = vld [vmem:[%s1045_s1 + $0x18] sm:$0xff]   ;;  %v815_v7 = vld [vmem:[%s1045_s1 + $0x10] sm:$0xff]   ;;  %s716_s13 = sshll.u32 %s1050_s19, 3 }
   0xd   : > { %755 = vmatpush3.bf16.msra.mxu0 %v810_v0  ;;  %794 = vmatpush3.bf16.msra.mxu1 %v810_v0  ;;  %s885_s27 = scalar_lea.vmem %s1044_s0, %s714_s24  ;;  %v816_v8 = vld [vmem:[%s1045_s1 + $0x8] sm:$0xff]   ;;  %v817_v9 = vld [vmem:[%s1045_s1] sm:$0xff]   ;;  %v910_v17 = vshrl.u32 %v462_v16, 7  ;;  %s927_s21 = scalar_lea.vmem %s1047_s3, %s716_s13 }
   0xe   : > { %756 = vmatprep.subr.bf16.mxu0 %v811_v1  ;;  %787 = vmatprep.subr.bf16.mxu1 %v811_v1  ;;  %v818_v4 = vld [vmem:[%s885_s27] sm:$0xff]   ;;  %v819_v10 = vld [vmem:[%s885_s27 + $0x8] sm:$0xff]   ;;  %v820_v12 = vld [vmem:[%s885_s27 + $0x10] sm:$0xff]   ;;  %s717_s19 = sshll.u32 %s1052_s16, 1 }
   0xf   : > { %770 = vmatprep.mubr.bf16.mxu0 %v818_v4  ;;  %v822_v6 = vld [vmem:[%s885_s27 + $0x20] sm:$0xff]   ;;  %v823_v11 = vld [vmem:[%s885_s27 + $0x28] sm:$0xff]   ;;  %v824_v13 = vld [vmem:[%s885_s27 + $0x30] sm:$0xff]   ;;  %v465_v19 = vadd.s32 16, %v910_v17  ;;  %v464_v20 = vadd.s32 8, %v910_v17  ;;  %v466_v22 = vadd.s32 24, %v910_v17  ;;  %v480_v24 = vadd.s32 %v921_v21, %v910_v17  ;;  %s211_s24 = scalar_lea.vmem %s1048_s4, %s717_s19 }
  0x10   : > { %778 = vmatprep.mubr.bf16.mxu1 %v822_v6  ;;  %v821_v14 = vld [vmem:[%s885_s27 + $0x18] sm:$0xff]   ;;  %v917_v18 = vld [vmem:[%s1046_s2] ss:$0 sm:$0xff]  ;;  %v469_v25 = vadd.s32 48, %v910_v17  ;;  %v467_v27 = vadd.s32 32, %v910_v17  ;;  %v470_v40 = vadd.s32 56, %v910_v17 }
  0x11   : > { %757 = vmatpush3.bf16.msra.mxu0 %v811_v1  ;;  %795 = vmatpush3.bf16.msra.mxu1 %v811_v1  ;;  %v825_v15 = vld [vmem:[%s885_s27 + $0x38] sm:$0xff]   ;;  %v482_v30 = vadd.s32 %v921_v21, %v465_v19  ;;  %v481_v32 = vadd.s32 %v921_v21, %v464_v20  ;;  %v483_v35 = vadd.s32 %v921_v21, %v466_v22  ;;  %vm496_vm0 = vcmp.lt.s32.totalorder %v480_v24, 288 }
  0x12   : > { %758 = vmatprep.subr.bf16.mxu0 %v812_v2  ;;  %788 = vmatprep.subr.bf16.mxu1 %v812_v2  ;;  %v948_v38 = vadd.s32 %v921_v21, %v469_v25  ;;  %v484_v39 = vadd.s32 %v921_v21, %v467_v27  ;;  %v468_v45 = vadd.s32 40, %v910_v17  ;;  %v471_v51 = vadd.s32 64, %v910_v17 }
  0x13   : > { %vm498_vm1 = vcmp.lt.s32.totalorder %v482_v30, 288  ;;  %vm497_vm2 = vcmp.lt.s32.totalorder %v481_v32, 288  ;;  %vm499_vm3 = vcmp.lt.s32.totalorder %v483_v35, 288  ;;  %v487_v52 = vadd.s32 %v921_v21, %v470_v40 }
  0x14   : > { %vm502_vm4 = vcmp.lt.s32.totalorder %v948_v38, 288  ;;  %vm500_vm5 = vcmp.lt.s32.totalorder %v484_v39, 288  ;;  %v485_v62 = vadd.s32 %v921_v21, %v468_v45  ;;  %v474_v22 = vadd.s32 88, %v910_v17 }
  0x15   : > { %759 = vmatpush3.bf16.msra.mxu0 %v812_v2  ;;  %796 = vmatpush3.bf16.msra.mxu1 %v812_v2  ;;  %v472_v2 = vadd.s32 72, %v910_v17  ;;  %vm503_vm7 = vcmp.lt.s32.totalorder %v487_v52, 288  ;;  %v477_v45 = vadd.s32 112, %v910_v17  ;;  %v478_v52 = vadd.s32 120, %v910_v17 }
  0x16   : > { %760 = vmatprep.subr.bf16.mxu0 %v813_v3  ;;  %789 = vmatprep.subr.bf16.mxu1 %v813_v3  ;;  %vm501_vm6 = vcmp.lt.s32.totalorder %v485_v62, 288  ;;  %v491_v39 = vadd.s32 %v921_v21, %v474_v22 }
  0x17   : > { %v489_v24 = vadd.s32 %v921_v21, %v472_v2 }
  0x18   : > { %vm507_vm11 = vcmp.lt.s32.totalorder %v491_v39, 288 }
  0x19   : > { %761 = vmatpush3.bf16.msra.mxu0 %v813_v3  ;;  %797 = vmatpush3.bf16.msra.mxu1 %v813_v3  ;;  %vm505_vm9 = vcmp.lt.s32.totalorder %v489_v24, 288 }
  0x1a   : > { %762 = vmatprep.subr.bf16.mxu0 %v814_v5  ;;  %790 = vmatprep.subr.bf16.mxu1 %v814_v5 }
  0x1d   : > { %763 = vmatpush3.bf16.msra.mxu0 %v814_v5  ;;  %798 = vmatpush3.bf16.msra.mxu1 %v814_v5 }
  0x1e   : > { %764 = vmatprep.subr.bf16.mxu0 %v815_v7  ;;  %791 = vmatprep.subr.bf16.mxu1 %v815_v7 }
  0x21   : > { %765 = vmatpush3.bf16.msra.mxu0 %v815_v7  ;;  %799 = vmatpush3.bf16.msra.mxu1 %v815_v7  ;;  %v473_v7 = vadd.s32 80, %v910_v17 }
  0x22   : > { %766 = vmatprep.subr.bf16.mxu0 %v816_v8  ;;  %792 = vmatprep.subr.bf16.mxu1 %v816_v8 }
  0x25   : > { %767 = vmatpush3.bf16.msra.mxu0 %v816_v8  ;;  %800 = vmatpush3.bf16.msra.mxu1 %v816_v8 }
  0x26   : > { %768 = vmatprep.subr.bf16.mxu0 %v817_v9  ;;  %793 = vmatprep.subr.bf16.mxu1 %v817_v9 }
  0x29   : > { %769 = vmatpush3.bf16.msra.mxu0 %v817_v9  ;;  %801 = vmatpush3.bf16.msra.mxu1 %v817_v9 }
  0x2c   : > { %771 = vmatmul.mubr.bf16.vlgmr.msra.gmra.mxu0 %v819_v10  ;;  %779 = vmatmul.mubr.bf16.vlgmr.msra.gmra.mxu1 %v823_v11  ;;  %v488_v11 = vadd.s32 %v921_v21, %v471_v51 }
  0x2d   : > { %774 = vmatprep.mubr.bf16.mxu0 %v820_v12  ;;  %782 = vmatprep.mubr.bf16.mxu1 %v824_v13 }
  0x2e   : > { %vm504_vm8 = vcmp.lt.s32.totalorder %v488_v11, 288 }
  0x34   : > { %775 = vmatmul.mubr.bf16.gmra.mxu0 %v821_v14  ;;  %783 = vmatmul.mubr.bf16.gmra.mxu1 %v825_v15 }
  0xec   : > { %v772_v23 = vpop.f32.mrf.mxu0  ;;  %v780_v26 = vpop.f32.mrf.mxu1 }
  0xed   : > { %v391_v28 = vadd.f32 %v772_v23, %v917_v18  ;;  %v935_v29 = vadd.f32 %v780_v26, %v917_v18 }
  0xee   : > { %v382_v31 = vpop.f32.mrf.mxu0  ;;  %v414_v33 = vpop.f32.mrf.mxu1 }
  0xef   : > { %447 = vst [vmem:[%s927_s21 + $0x10] sm:$0xff] %v391_v28  ;;  %v383_v34 = vadd.f32 %v917_v18, %v382_v31  ;;  %455 = vst [vmem:[%s927_s21 + $0x50] sm:$0xff] %v935_v29  ;;  %v945_v36 = vadd.f32 %v917_v18, %v414_v33  ;;  %v546_v54 = vsel %vm498_vm1, %v391_v28, 0.0  ;;  %v490_v31 = vadd.s32 %v921_v21, %v473_v7 }
  0xf0   : > { %v773_v37 = vpop.f32.mrf.mxu0  ;;  %v781_v41 = vpop.f32.mrf.mxu1  ;;  %v583_v4 = vmul.f32 %v546_v54, %v391_v28 }
  0xf1   : > { %445 = vst [vmem:[%s927_s21] sm:$0xff] %v383_v34  ;;  %v394_v42 = vadd.f32 %v773_v37, %v917_v18  ;;  %453 = vst [vmem:[%s927_s21 + $0x40] sm:$0xff] %v945_v36  ;;  %v957_v43 = vadd.f32 %v781_v41, %v917_v18  ;;  %v544_v47 = vsel %vm496_vm0, %v383_v34, 0.0  ;;  %v475_v37 = vadd.s32 96, %v910_v17 }
  0xf2   : > { %v385_v44 = vpop.f32.mrf.mxu0  ;;  %v417_v46 = vpop.f32.mrf.mxu1  ;;  %v581_v58 = vmul.f32 %v544_v47, %v383_v34  ;;  %vm506_vm10 = vcmp.lt.s32.totalorder %v490_v31, 288  ;;  %vm618_vm0 = vcmask 1040384  }
  0xf3   : > { %448 = vst [vmem:[%s927_s21 + $0x18] sm:$0xff] %v394_v42  ;;  %v386_v48 = vadd.f32 %v917_v18, %v385_v44  ;;  %456 = vst [vmem:[%s927_s21 + $0x58] sm:$0xff] %v957_v43  ;;  %v965_v49 = vadd.f32 %v917_v18, %v417_v46  ;;  %v547_v0 = vsel %vm499_vm3, %v394_v42, 0.0  ;;  %v552_v44 = vsel %vm504_vm8, %v945_v36, 0.0 }
  0xf4   : > { %v776_v50 = vpop.f32.mrf.mxu0  ;;  %v784_v53 = vpop.f32.mrf.mxu1  ;;  %v584_v14 = vmul.f32 %v547_v0, %v394_v42  ;;  %v476_v42 = vadd.s32 104, %v910_v17 }
  0xf5   : > { %446 = vst [vmem:[%s927_s21 + $0x8] sm:$0xff] %v386_v48  ;;  %v545_v55 = vsel %vm497_vm2, %v386_v48, 0.0  ;;  %v407_v56 = vadd.f32 %v776_v50, %v917_v18  ;;  %454 = vst [vmem:[%s927_s21 + $0x48] sm:$0xff] %v965_v49  ;;  %v977_v57 = vadd.f32 %v784_v53, %v917_v18  ;;  %v492_v50 = vadd.s32 %v921_v21, %v475_v37 }
  0xf6   : > { %v560_v59 = vadd.f32 %v545_v55, %v544_v47  ;;  %v582_v60 = vmul.f32 %v545_v55, %v386_v48  ;;  %v398_v61 = vpop.f32.mrf.mxu0  ;;  %v430_v63 = vpop.f32.mrf.mxu1  ;;  %v553_v51 = vsel %vm505_vm9, %v965_v49, 0.0  ;;  %v589_v53 = vmul.f32 %v552_v44, %v945_v36 }
  0xf7   : > { %451 = vst [vmem:[%s927_s21 + $0x30] sm:$0xff] %v407_v56  ;;  %v399_v1 = vadd.f32 %v917_v18, %v398_v61  ;;  %459 = vst [vmem:[%s927_s21 + $0x70] sm:$0xff] %v977_v57  ;;  %v987_v3 = vadd.f32 %v917_v18, %v430_v63  ;;  %v550_v30 = vsel %vm502_vm4, %v407_v56, 0.0  ;;  %v590_v61 = vmul.f32 %v553_v51, %v965_v49 }
  0xf8   : > { %v561_v5 = vadd.f32 %v560_v59, %v546_v54  ;;  %v597_v6 = vadd.f32 %v582_v60, %v581_v58  ;;  %v777_v8 = vpop.f32.mrf.mxu0  ;;  %v785_v9 = vpop.f32.mrf.mxu1  ;;  %v587_v40 = vmul.f32 %v550_v30, %v407_v56  ;;  %v493_v56 = vadd.s32 %v921_v21, %v476_v42 }
  0xf9   : > { %449 = vst [vmem:[%s927_s21 + $0x20] sm:$0xff] %v399_v1  ;;  %v548_v10 = vsel %vm500_vm5, %v399_v1, 0.0  ;;  %v410_v12 = vadd.f32 %v777_v8, %v917_v18  ;;  %457 = vst [vmem:[%s927_s21 + $0x60] sm:$0xff] %v987_v3  ;;  %v997_v13 = vadd.f32 %v785_v9, %v917_v18  ;;  %v554_v58 = vsel %vm506_vm10, %v935_v29, 0.0 }
  0xfa   : > { %v598_v15 = vadd.f32 %v597_v6, %v583_v4  ;;  %v562_v16 = vadd.f32 %v561_v5, %v547_v0  ;;  %v401_v19 = vpop.f32.mrf.mxu0  ;;  %v433_v20 = vpop.f32.mrf.mxu1  ;;  %v585_v27 = vmul.f32 %v548_v10, %v399_v1  ;;  %v494_v59 = vadd.s32 %v921_v21, %v477_v45 }
  0xfb   : > { %452 = vst [vmem:[%s927_s21 + $0x38] sm:$0xff] %v410_v12  ;;  %v402_v23 = vadd.f32 %v917_v18, %v401_v19  ;;  %460 = vst [vmem:[%s927_s21 + $0x78] sm:$0xff] %v997_v13  ;;  %v434_v25 = vadd.f32 %v917_v18, %v433_v20  ;;  %v551_v18 = vsel %vm503_vm7, %v410_v12, 0.0  ;;  %vm508_vm12 = vcmp.lt.s32.totalorder %v492_v50, 288 }
  0xfc   : > { %v563_v26 = vadd.f32 %v562_v16, %v548_v10  ;;  %v599_v28 = vadd.f32 %v598_v15, %v584_v14  ;;  %v588_v46 = vmul.f32 %v551_v18, %v410_v12  ;;  %v555_v63 = vsel %vm507_vm11, %v957_v43, 0.0 }
  0xfd   : > { %450 = vst [vmem:[%s927_s21 + $0x28] sm:$0xff] %v402_v23  ;;  %v549_v32 = vsel %vm501_vm6, %v402_v23, 0.0  ;;  %458 = vst [vmem:[%s927_s21 + $0x68] sm:$0xff] %v434_v25  ;;  %v495_v0 = vadd.s32 %v921_v21, %v478_v52  ;;  %v591_v17 = vmul.f32 %v554_v58, %v935_v29  ;;  %vm509_vm13 = vcmp.lt.s32.totalorder %v493_v56, 288 }
  0xfe   : > { %v600_v33 = vadd.f32 %v599_v28, %v585_v27  ;;  %v564_v34 = vadd.f32 %v563_v26, %v549_v32  ;;  %v586_v35 = vmul.f32 %v549_v32, %v402_v23  ;;  %v556_v2 = vsel %vm508_vm12, %v987_v3, 0.0 }
  0xff   : > { %v592_v4 = vmul.f32 %v555_v63, %v957_v43  ;;  %vm510_vm14 = vcmp.lt.s32.totalorder %v494_v59, 288  ;;  %v557_v7 = vsel %vm509_vm13, %v434_v25, 0.0  ;;  %v593_v8 = vmul.f32 %v556_v2, %v987_v3 }
 0x100   : > { %v565_v41 = vadd.f32 %v564_v34, %v550_v30  ;;  %v601_v38 = vadd.f32 %v600_v33, %v586_v35  ;;  %vm511_vm15 = vcmp.lt.s32.totalorder %v495_v0, 288  ;;  %v558_v21 = vsel %vm510_vm14, %v977_v57, 0.0 }
 0x101   : > { %v594_v11 = vmul.f32 %v557_v7, %v434_v25  ;;  %v559_v12 = vsel %vm511_vm15, %v997_v13, 0.0  ;;  %v595_v43 = vmul.f32 %v558_v21, %v977_v57 }
 0x102   : > { %v602_v47 = vadd.f32 %v601_v38, %v587_v40  ;;  %v566_v48 = vadd.f32 %v565_v41, %v551_v18  ;;  %v596_v16 = vmul.f32 %v559_v12, %v997_v13 }
 0x104   : > { %v567_v54 = vadd.f32 %v566_v48, %v552_v44  ;;  %v603_v55 = vadd.f32 %v602_v47, %v588_v46 }
 0x106   : > { %v568_v60 = vadd.f32 %v567_v54, %v553_v51  ;;  %v604_v62 = vadd.f32 %v603_v55, %v589_v53 }
 0x108   : > { %v569_v36 = vadd.f32 %v568_v60, %v554_v58  ;;  %v605_v1 = vadd.f32 %v604_v62, %v590_v61 }
 0x10a   : > { %v606_v5 = vadd.f32 %v605_v1, %v591_v17  ;;  %v570_v6 = vadd.f32 %v569_v36, %v555_v63 }
 0x10c   : > { %v571_v49 = vadd.f32 %v570_v6, %v556_v2  ;;  %v607_v9 = vadd.f32 %v606_v5, %v592_v4 }
 0x10e   : > { %v608_v29 = vadd.f32 %v607_v9, %v593_v8  ;;  %v572_v10 = vadd.f32 %v571_v49, %v557_v7 }
 0x110   : > { %v573_v14 = vadd.f32 %v572_v10, %v558_v21  ;;  %v609_v15 = vadd.f32 %v608_v29, %v594_v11 }
 0x112   : > { %v574_v19 = vadd.f32 %v573_v14, %v559_v12  ;;  %v610_v20 = vadd.f32 %v609_v15, %v595_v43 }
 0x114   : > { %v575_v3 = vrot.slane %v574_v19, 4  ;;  %v611_v22 = vadd.f32 %v610_v20, %v596_v16 }
 0x116   : > { %v576_v23 = vadd.f32 %v575_v3, %v574_v19  ;;  %v612_v24 = vrot.slane %v611_v22, 4 }
 0x118   : > { %v577_v26 = vrot.slane %v576_v23, 2  ;;  %v613_v27 = vadd.f32 %v612_v24, %v611_v22 }
 0x11a   : > { %v578_v28 = vadd.f32 %v577_v26, %v576_v23  ;;  %v614_v25 = vrot.slane %v613_v27, 2 }
 0x11c   : > { %v579_v30 = vrot.slane %v578_v28, 1  ;;  %v615_v31 = vadd.f32 %v614_v25, %v613_v27 }
 0x11e   : > { %v616_v57 = vrot.slane %v615_v31, 1  ;;  %v580_v13 = vadd.f32 %v579_v30, %v578_v28 }
 0x120   : > { %v617_v32 = vadd.f32 %v616_v57, %v615_v31 }
 0x122   : > { %v619_v33 = vsel %vm618_vm0, %v580_v13, %v617_v32 }
 0x123   : > { %620 = vst [vmem:[%s211_s24] sm:$0x3] %v619_v33 }
 0x124 PF: > { %s15_s15 = sadd.s32 1, %s832_s15  }
 0x125   : > { %p12_p5 = scmp.ge.s32.totalorder %s15_s15, 5  }
 0x127   :  { %14 = sbr.rel (!%p12_p5) target bundleno = 1 (0x1), region = 74 }

</bundles_post_ra>
